<compile_context>
chip_gen: v6e
topology: v6e:2x2x1
jax: 0.10.0
libtpu: 0.0.40
codegen_flags: <defaults>
</compile_context>

<pallas_src>
import math

import jax
import jax.numpy as jnp
from jax.experimental import pallas as pl
from jax.experimental.pallas import tpu as pltpu

# ---------------- sizes (small, forward-consistent) ----------------
VOCAB = 40          # len(vocab): token ids drawn from [0, VOCAB)
VOCAB_PAD = 64      # embedding rows padded (unused rows never selected)
E = 32              # hp.e  (embedding dim)
D = 16              # hp.d  (Text2Mel dim)
C = 2 * D           # internal channel width = 2*d = 32
B = 2               # batch
N = 8               # text length
BN = B * N

# (kernel_size, dilation) for the 12 BasicBlocks of TextEnc
BLOCK_CFG = [(3, 1), (3, 3), (3, 9), (3, 27),
             (3, 1), (3, 3), (3, 9), (3, 27),
             (3, 1), (3, 1),
             (1, 1), (1, 1)]   # last two are BasicBlock_Penultimate / _Last
NBLOCKS = len(BLOCK_CFG)
KTAPS = 3


# ---------------- fused Pallas kernel ----------------
def _textenc_fused_kernel(ids_ref, tab_ref, c2w_ref, c2b_ref, hww_ref, hwb_ref, o_ref):
    f32 = jnp.float32
    bf16 = jnp.bfloat16

    # ---- embedding lookup + Conv(e, 2d, 1, 1, relu) fused into one table matmul ----
    # T = embedding @ c1_w + c1_b was precomputed; exact because one-hot rows sum to 1.
    ids = ids_ref[...]                                                  # (BN, 1) int32
    iota_v = jax.lax.broadcasted_iota(jnp.int32, (BN, VOCAB_PAD), 1)    # (BN, 64)
    one_hot = (ids == iota_v).astype(bf16)                              # (BN, 64)
    x = jnp.dot(one_hot, tab_ref[...], preferred_element_type=f32)      # (BN, C)
    x = jnp.maximum(x, 0.0)

    # ---- Conv(2d, 2d, 1, 1, linear) ----
    x = jnp.dot(x.astype(bf16), c2w_ref[...], preferred_element_type=f32) + c2b_ref[...]

    # Time index (within each batch element) of every row of the flat (BN, C) layout.
    # Used to zero the wrap-around / cross-batch entries produced by the rolls, which
    # exactly reproduces SAME zero-padding semantics.
    pos_n = jax.lax.broadcasted_iota(jnp.int32, (BN, C), 0) % N         # (BN, C)

    # ---- 12 highway blocks, fully unrolled, all weights VMEM-resident ----
    for blk, (k, dil) in enumerate(BLOCK_CFG):
        x_b = x.astype(bf16)
        # center tap: every block
        h = jnp.dot(x_b, hww_ref[blk, 1], preferred_element_type=f32)   # (BN, 2C)

        # off-center taps only when they can be non-zero (k==3 and dil < N);
        # dil >= N (9, 27 at N=8) and k==1 blocks statically reduce to the center tap.
        if k == 3 and dil < N:
            # left tap  x[n - dil]  (valid where n >= dil)
            left = pltpu.roll(x, shift=dil, axis=0)                      # rolled[m] = x[m - dil]
            left = jnp.where(pos_n >= dil, left, 0.0)
            h += jnp.dot(left.astype(bf16), hww_ref[blk, 0],
                         preferred_element_type=f32)
            # right tap x[n + dil]  (valid where n < N - dil)
            right = pltpu.roll(x, shift=BN - dil, axis=0)                # rolled[m] = x[m + dil]
            right = jnp.where(pos_n < N - dil, right, 0.0)
            h += jnp.dot(right.astype(bf16), hww_ref[blk, 2],
                         preferred_element_type=f32)

        h = h + hwb_ref[blk]                                             # (BN, 2C)
        g = jax.nn.sigmoid(h[:, :C])                                     # H1 -> gate (f32, EUP)
        x = x + g * (h[:, C:] - x)                                       # highway residual (f32)

    o_ref[...] = x.reshape(B, N, C).astype(o_ref.dtype)


# ---------------- wrapper ----------------
def text_enc(text, params):
    """text: (B, N) int32 token ids  ->  (K, V), each (B, d, N) in PyTorch NCW layout."""
    # ids outside [0, VOCAB_PAD) would silently map to a zero embedding (no OOB fault).
    ids = text.reshape(BN, 1).astype(jnp.int32)
    out = pl.pallas_call(
        _textenc_fused_kernel,
        out_shape=jax.ShapeDtypeStruct((B, N, C), jnp.float32),
    )(ids,
      params['emb_c1_table'],
      params['c2_w'], params['c2_b'],
      params['hw_w'], params['hw_b'])
    # K/V split + transpose back to (B, d, N) in the XLA epilogue (lane-dense kernel out)
    K = jnp.transpose(out[..., :D], (0, 2, 1))
    V = jnp.transpose(out[..., D:], (0, 2, 1))
    return K, V


# ---------------- parameters (deterministic, synthetic, pre-stacked) ----------------
def init_params(key):
    keys = jax.random.split(key, 3 + 2 * NBLOCKS)
    it = iter(keys)
    p = {}

    emb = 0.5 * jax.random.normal(next(it), (VOCAB, E), jnp.float32)
    emb_pad = jnp.zeros((VOCAB_PAD, E), jnp.float32).at[:VOCAB].set(emb)

    # Conv(e, 2d, 1, 1, relu)
    c1_w = jax.random.normal(next(it), (E, C), jnp.float32) / math.sqrt(E)
    c1_b = jnp.zeros((1, C), jnp.float32)
    # Fused embedding + conv1 table: one_hot @ (emb @ c1_w + c1_b) == (one_hot @ emb) @ c1_w + c1_b
    p['emb_c1_table'] = (emb_pad @ c1_w + c1_b).astype(jnp.bfloat16)     # (64, C)

    # Conv(2d, 2d, 1, 1, linear)
    p['c2_w'] = (jax.random.normal(next(it), (C, C), jnp.float32) / math.sqrt(C)
                 ).astype(jnp.bfloat16)
    p['c2_b'] = jnp.zeros((1, C), jnp.float32)

    # Stacked highway weights: per block (KTAPS, C, 2C) with (w1 || w2) on Cout.
    # Tap t multiplies x[n + (t-1)*dil].  k=1 blocks keep only the center tap.
    ws, bs = [], []
    for (k, _dil) in BLOCK_CFG:
        scale = 1.0 / math.sqrt(k * C)
        w1 = scale * jax.random.normal(next(it), (KTAPS, C, C), jnp.float32)
        w2 = scale * jax.random.normal(next(it), (KTAPS, C, C), jnp.float32)
        if k == 1:
            mask = jnp.array([0.0, 1.0, 0.0], jnp.float32).reshape(KTAPS, 1, 1)
            w1 = w1 * mask
            w2 = w2 * mask
        ws.append(jnp.concatenate([w1, w2], axis=-1))     # (KTAPS, C, 2C)
        bs.append(jnp.zeros((1, 2 * C), jnp.float32))
    p['hw_w'] = jnp.stack(ws).astype(jnp.bfloat16)        # (12, 3, 32, 64)
    p['hw_b'] = jnp.stack(bs)                             # (12, 1, 64)  (f32)
    return p


if __name__ == "__main__":
    key = jax.random.PRNGKey(0)
    k_text, k_par = jax.random.split(key)
    text = jax.random.randint(k_text, (B, N), 0, VOCAB, dtype=jnp.int32)
    params = init_params(k_par)

    K, V = jax.jit(text_enc)(text, params)
    jax.block_until_ready((K, V))

    assert K.shape == (B, D, N), K.shape
    assert V.shape == (B, D, N), V.shape
    assert K.dtype == jnp.float32 and V.dtype == jnp.float32
    assert bool(jnp.all(jnp.isfinite(K))) and bool(jnp.all(jnp.isfinite(V)))
    print("KERNEL_OK")
</pallas_src>

<mosaic_0001>
module attributes {stable_mosaic.version = 11 : i64} {
  func.func @_textenc_fused_kernel(%arg0: memref<16x1xi32, #tpu.memory_space<vmem>>, %arg1: memref<64x32xbf16, #tpu.memory_space<vmem>>, %arg2: memref<32x32xbf16, #tpu.memory_space<vmem>>, %arg3: memref<1x32xf32, #tpu.memory_space<vmem>>, %arg4: memref<12x3x32x64xbf16, #tpu.memory_space<vmem>>, %arg5: memref<12x1x64xf32, #tpu.memory_space<vmem>>, %arg6: memref<2x8x32xf32, #tpu.memory_space<vmem>>) attributes {dimension_semantics = [], scalar_prefetch = 0 : i64, scratch_operands = 0 : i64, tpu.core_type = #tpu.core_type<tc>} {
    %c0 = arith.constant 0 : index
    %c0_0 = arith.constant 0 : index
    %0 = vector.load %arg0[%c0, %c0_0] : memref<16x1xi32, #tpu.memory_space<vmem>>, vector<16x1xi32>
    %1 = tpu.iota {dimensions = array<i32: 1>} : vector<16x64xi32>
    %2 = vector.broadcast %0 : vector<16x1xi32> to vector<16x64xi32>
    %3 = arith.cmpi eq, %2, %1 : vector<16x64xi32>
    %4 = arith.extui %3 : vector<16x64xi1> to vector<16x64xi32>
    %5 = arith.sitofp %4 : vector<16x64xi32> to vector<16x64xf32>
    %6 = arith.truncf %5 : vector<16x64xf32> to vector<16x64xbf16>
    %c0_1 = arith.constant 0 : index
    %c0_2 = arith.constant 0 : index
    %7 = vector.load %arg1[%c0_1, %c0_2] : memref<64x32xbf16, #tpu.memory_space<vmem>>, vector<64x32xbf16>
    %cst = arith.constant dense<0.000000e+00> : vector<16x32xf32>
    %8 = tpu.matmul %6, %7, %cst {dimension_numbers = #tpu.dot_dimension_numbers<[1], [0], [0], [1], [0, 0, 1, 1], [], []>} : vector<16x64xbf16>, vector<64x32xbf16>, vector<16x32xf32> -> vector<16x32xf32>
    %cst_3 = arith.constant 0.000000e+00 : f32
    %9 = vector.broadcast %cst_3 : f32 to vector<16x32xf32>
    %10 = arith.maximumf %8, %9 : vector<16x32xf32>
    %11 = arith.truncf %10 : vector<16x32xf32> to vector<16x32xbf16>
    %c0_4 = arith.constant 0 : index
    %c0_5 = arith.constant 0 : index
    %12 = vector.load %arg2[%c0_4, %c0_5] : memref<32x32xbf16, #tpu.memory_space<vmem>>, vector<32x32xbf16>
    %cst_6 = arith.constant dense<0.000000e+00> : vector<16x32xf32>
    %13 = tpu.matmul %11, %12, %cst_6 {dimension_numbers = #tpu.dot_dimension_numbers<[1], [0], [0], [1], [0, 0, 1, 1], [], []>} : vector<16x32xbf16>, vector<32x32xbf16>, vector<16x32xf32> -> vector<16x32xf32>
    %c0_7 = arith.constant 0 : index
    %c0_8 = arith.constant 0 : index
    %14 = vector.load %arg3[%c0_7, %c0_8] : memref<1x32xf32, #tpu.memory_space<vmem>>, vector<1x32xf32>
    %15 = vector.broadcast %14 : vector<1x32xf32> to vector<16x32xf32>
    %16 = arith.addf %13, %15 : vector<16x32xf32>
    %17 = tpu.iota {dimensions = array<i32: 0>} : vector<16x32xi32>
    %c8_i32 = arith.constant 8 : i32
    %c0_i32 = arith.constant 0 : i32
    %18 = arith.cmpi eq, %c8_i32, %c0_i32 : i32
    %c1_i32 = arith.constant 1 : i32
    %19 = arith.select %18, %c1_i32, %c8_i32 : i32
    %20 = vector.broadcast %19 : i32 to vector<16x32xi32>
    %21 = arith.remsi %17, %20 : vector<16x32xi32>
    %c0_i32_9 = arith.constant 0 : i32
    %22 = vector.broadcast %c0_i32_9 : i32 to vector<16x32xi32>
    %23 = arith.cmpi ne, %21, %22 : vector<16x32xi32>
    %c0_i32_10 = arith.constant 0 : i32
    %24 = vector.broadcast %c0_i32_10 : i32 to vector<16x32xi32>
    %25 = arith.cmpi slt, %21, %24 : vector<16x32xi32>
    %c0_i32_11 = arith.constant 0 : i32
    %26 = arith.cmpi slt, %19, %c0_i32_11 : i32
    %27 = vector.broadcast %26 : i1 to vector<16x32xi1>
    %28 = vector.broadcast %27 : vector<16x32xi1> to vector<16x32xi1>
    %29 = arith.xori %25, %28 : vector<16x32xi1>
    %30 = arith.andi %29, %23 : vector<16x32xi1>
    %31 = vector.broadcast %19 : i32 to vector<16x32xi32>
    %32 = arith.addi %21, %31 : vector<16x32xi32>
    %33 = arith.select %30, %32, %21 : vector<16x32xi1>, vector<16x32xi32>
    %34 = arith.truncf %16 : vector<16x32xf32> to vector<16x32xbf16>
    %c0_12 = arith.constant 0 : index
    %c1 = arith.constant 1 : index
    %c0_13 = arith.constant 0 : index
    %c0_14 = arith.constant 0 : index
    %35 = vector.load %arg4[%c0_12, %c1, %c0_13, %c0_14] : memref<12x3x32x64xbf16, #tpu.memory_space<vmem>>, vector<1x1x32x64xbf16>
    %36 = vector.shape_cast %35 : vector<1x1x32x64xbf16> to vector<32x64xbf16>
    %cst_15 = arith.constant dense<0.000000e+00> : vector<16x64xf32>
    %37 = tpu.matmul %34, %36, %cst_15 {dimension_numbers = #tpu.dot_dimension_numbers<[1], [0], [0], [1], [0, 0, 1, 1], [], []>} : vector<16x32xbf16>, vector<32x64xbf16>, vector<16x64xf32> -> vector<16x64xf32>
    %c1_i32_16 = arith.constant 1 : i32
    %38 = tpu.dynamic_rotate %16 by %c1_i32_16 dim 0 : vector<16x32xf32>, i32 -> vector<16x32xf32>
    %c1_i32_17 = arith.constant 1 : i32
    %39 = vector.broadcast %c1_i32_17 : i32 to vector<16x32xi32>
    %40 = arith.cmpi sge, %33, %39 : vector<16x32xi32>
    %cst_18 = arith.constant 0.000000e+00 : f32
    %41 = vector.broadcast %cst_18 : f32 to vector<16x32xf32>
    %42 = arith.select %40, %38, %41 : vector<16x32xi1>, vector<16x32xf32>
    %43 = arith.truncf %42 : vector<16x32xf32> to vector<16x32xbf16>
    %c0_19 = arith.constant 0 : index
    %c0_20 = arith.constant 0 : index
    %c0_21 = arith.constant 0 : index
    %c0_22 = arith.constant 0 : index
    %44 = vector.load %arg4[%c0_19, %c0_20, %c0_21, %c0_22] : memref<12x3x32x64xbf16, #tpu.memory_space<vmem>>, vector<1x1x32x64xbf16>
    %45 = vector.shape_cast %44 : vector<1x1x32x64xbf16> to vector<32x64xbf16>
    %cst_23 = arith.constant dense<0.000000e+00> : vector<16x64xf32>
    %46 = tpu.matmul %43, %45, %cst_23 {dimension_numbers = #tpu.dot_dimension_numbers<[1], [0], [0], [1], [0, 0, 1, 1], [], []>} : vector<16x32xbf16>, vector<32x64xbf16>, vector<16x64xf32> -> vector<16x64xf32>
    %47 = arith.addf %37, %46 : vector<16x64xf32>
    %c15_i32 = arith.constant 15 : i32
    %48 = tpu.dynamic_rotate %16 by %c15_i32 dim 0 : vector<16x32xf32>, i32 -> vector<16x32xf32>
    %c7_i32 = arith.constant 7 : i32
    %49 = vector.broadcast %c7_i32 : i32 to vector<16x32xi32>
    %50 = arith.cmpi slt, %33, %49 : vector<16x32xi32>
    %cst_24 = arith.constant 0.000000e+00 : f32
    %51 = vector.broadcast %cst_24 : f32 to vector<16x32xf32>
    %52 = arith.select %50, %48, %51 : vector<16x32xi1>, vector<16x32xf32>
    %53 = arith.truncf %52 : vector<16x32xf32> to vector<16x32xbf16>
    %c0_25 = arith.constant 0 : index
    %c2 = arith.constant 2 : index
    %c0_26 = arith.constant 0 : index
    %c0_27 = arith.constant 0 : index
    %54 = vector.load %arg4[%c0_25, %c2, %c0_26, %c0_27] : memref<12x3x32x64xbf16, #tpu.memory_space<vmem>>, vector<1x1x32x64xbf16>
    %55 = vector.shape_cast %54 : vector<1x1x32x64xbf16> to vector<32x64xbf16>
    %cst_28 = arith.constant dense<0.000000e+00> : vector<16x64xf32>
    %56 = tpu.matmul %53, %55, %cst_28 {dimension_numbers = #tpu.dot_dimension_numbers<[1], [0], [0], [1], [0, 0, 1, 1], [], []>} : vector<16x32xbf16>, vector<32x64xbf16>, vector<16x64xf32> -> vector<16x64xf32>
    %57 = arith.addf %47, %56 : vector<16x64xf32>
    %c0_29 = arith.constant 0 : index
    %c0_30 = arith.constant 0 : index
    %c0_31 = arith.constant 0 : index
    %58 = vector.load %arg5[%c0_29, %c0_30, %c0_31] : memref<12x1x64xf32, #tpu.memory_space<vmem>>, vector<1x1x64xf32>
    %59 = vector.shape_cast %58 : vector<1x1x64xf32> to vector<1x64xf32>
    %60 = vector.broadcast %59 : vector<1x64xf32> to vector<16x64xf32>
    %61 = arith.addf %57, %60 : vector<16x64xf32>
    %62 = vector.extract_strided_slice %61 {offsets = [0, 0], sizes = [16, 32], strides = [1, 1]} : vector<16x64xf32> to vector<16x32xf32>
    %63 = arith.negf %62 : vector<16x32xf32>
    %64 = math.exp %63 : vector<16x32xf32>
    %cst_32 = arith.constant 1.000000e+00 : f32
    %65 = vector.broadcast %cst_32 : f32 to vector<16x32xf32>
    %66 = arith.addf %65, %64 : vector<16x32xf32>
    %67 = arith.divf %65, %66 : vector<16x32xf32>
    %68 = vector.extract_strided_slice %61 {offsets = [0, 32], sizes = [16, 32], strides = [1, 1]} : vector<16x64xf32> to vector<16x32xf32>
    %69 = arith.subf %68, %16 : vector<16x32xf32>
    %70 = arith.mulf %67, %69 : vector<16x32xf32>
    %71 = arith.addf %16, %70 : vector<16x32xf32>
    %72 = arith.truncf %71 : vector<16x32xf32> to vector<16x32xbf16>
    %c1_33 = arith.constant 1 : index
    %c1_34 = arith.constant 1 : index
    %c0_35 = arith.constant 0 : index
    %c0_36 = arith.constant 0 : index
    %73 = vector.load %arg4[%c1_33, %c1_34, %c0_35, %c0_36] : memref<12x3x32x64xbf16, #tpu.memory_space<vmem>>, vector<1x1x32x64xbf16>
    %74 = vector.shape_cast %73 : vector<1x1x32x64xbf16> to vector<32x64xbf16>
    %cst_37 = arith.constant dense<0.000000e+00> : vector<16x64xf32>
    %75 = tpu.matmul %72, %74, %cst_37 {dimension_numbers = #tpu.dot_dimension_numbers<[1], [0], [0], [1], [0, 0, 1, 1], [], []>} : vector<16x32xbf16>, vector<32x64xbf16>, vector<16x64xf32> -> vector<16x64xf32>
    %c3_i32 = arith.constant 3 : i32
    %76 = tpu.dynamic_rotate %71 by %c3_i32 dim 0 : vector<16x32xf32>, i32 -> vector<16x32xf32>
    %c3_i32_38 = arith.constant 3 : i32
    %77 = vector.broadcast %c3_i32_38 : i32 to vector<16x32xi32>
    %78 = arith.cmpi sge, %33, %77 : vector<16x32xi32>
    %cst_39 = arith.constant 0.000000e+00 : f32
    %79 = vector.broadcast %cst_39 : f32 to vector<16x32xf32>
    %80 = arith.select %78, %76, %79 : vector<16x32xi1>, vector<16x32xf32>
    %81 = arith.truncf %80 : vector<16x32xf32> to vector<16x32xbf16>
    %c1_40 = arith.constant 1 : index
    %c0_41 = arith.constant 0 : index
    %c0_42 = arith.constant 0 : index
    %c0_43 = arith.constant 0 : index
    %82 = vector.load %arg4[%c1_40, %c0_41, %c0_42, %c0_43] : memref<12x3x32x64xbf16, #tpu.memory_space<vmem>>, vector<1x1x32x64xbf16>
    %83 = vector.shape_cast %82 : vector<1x1x32x64xbf16> to vector<32x64xbf16>
    %cst_44 = arith.constant dense<0.000000e+00> : vector<16x64xf32>
    %84 = tpu.matmul %81, %83, %cst_44 {dimension_numbers = #tpu.dot_dimension_numbers<[1], [0], [0], [1], [0, 0, 1, 1], [], []>} : vector<16x32xbf16>, vector<32x64xbf16>, vector<16x64xf32> -> vector<16x64xf32>
    %85 = arith.addf %75, %84 : vector<16x64xf32>
    %c13_i32 = arith.constant 13 : i32
    %86 = tpu.dynamic_rotate %71 by %c13_i32 dim 0 : vector<16x32xf32>, i32 -> vector<16x32xf32>
    %c5_i32 = arith.constant 5 : i32
    %87 = vector.broadcast %c5_i32 : i32 to vector<16x32xi32>
    %88 = arith.cmpi slt, %33, %87 : vector<16x32xi32>
    %cst_45 = arith.constant 0.000000e+00 : f32
    %89 = vector.broadcast %cst_45 : f32 to vector<16x32xf32>
    %90 = arith.select %88, %86, %89 : vector<16x32xi1>, vector<16x32xf32>
    %91 = arith.truncf %90 : vector<16x32xf32> to vector<16x32xbf16>
    %c1_46 = arith.constant 1 : index
    %c2_47 = arith.constant 2 : index
    %c0_48 = arith.constant 0 : index
    %c0_49 = arith.constant 0 : index
    %92 = vector.load %arg4[%c1_46, %c2_47, %c0_48, %c0_49] : memref<12x3x32x64xbf16, #tpu.memory_space<vmem>>, vector<1x1x32x64xbf16>
    %93 = vector.shape_cast %92 : vector<1x1x32x64xbf16> to vector<32x64xbf16>
    %cst_50 = arith.constant dense<0.000000e+00> : vector<16x64xf32>
    %94 = tpu.matmul %91, %93, %cst_50 {dimension_numbers = #tpu.dot_dimension_numbers<[1], [0], [0], [1], [0, 0, 1, 1], [], []>} : vector<16x32xbf16>, vector<32x64xbf16>, vector<16x64xf32> -> vector<16x64xf32>
    %95 = arith.addf %85, %94 : vector<16x64xf32>
    %c1_51 = arith.constant 1 : index
    %c0_52 = arith.constant 0 : index
    %c0_53 = arith.constant 0 : index
    %96 = vector.load %arg5[%c1_51, %c0_52, %c0_53] : memref<12x1x64xf32, #tpu.memory_space<vmem>>, vector<1x1x64xf32>
    %97 = vector.shape_cast %96 : vector<1x1x64xf32> to vector<1x64xf32>
    %98 = vector.broadcast %97 : vector<1x64xf32> to vector<16x64xf32>
    %99 = arith.addf %95, %98 : vector<16x64xf32>
    %100 = vector.extract_strided_slice %99 {offsets = [0, 0], sizes = [16, 32], strides = [1, 1]} : vector<16x64xf32> to vector<16x32xf32>
    %101 = arith.negf %100 : vector<16x32xf32>
    %102 = math.exp %101 : vector<16x32xf32>
    %cst_54 = arith.constant 1.000000e+00 : f32
    %103 = vector.broadcast %cst_54 : f32 to vector<16x32xf32>
    %104 = arith.addf %103, %102 : vector<16x32xf32>
    %105 = arith.divf %103, %104 : vector<16x32xf32>
    %106 = vector.extract_strided_slice %99 {offsets = [0, 32], sizes = [16, 32], strides = [1, 1]} : vector<16x64xf32> to vector<16x32xf32>
    %107 = arith.subf %106, %71 : vector<16x32xf32>
    %108 = arith.mulf %105, %107 : vector<16x32xf32>
    %109 = arith.addf %71, %108 : vector<16x32xf32>
    %110 = arith.truncf %109 : vector<16x32xf32> to vector<16x32xbf16>
    %c2_55 = arith.constant 2 : index
    %c1_56 = arith.constant 1 : index
    %c0_57 = arith.constant 0 : index
    %c0_58 = arith.constant 0 : index
    %111 = vector.load %arg4[%c2_55, %c1_56, %c0_57, %c0_58] : memref<12x3x32x64xbf16, #tpu.memory_space<vmem>>, vector<1x1x32x64xbf16>
    %112 = vector.shape_cast %111 : vector<1x1x32x64xbf16> to vector<32x64xbf16>
    %cst_59 = arith.constant dense<0.000000e+00> : vector<16x64xf32>
    %113 = tpu.matmul %110, %112, %cst_59 {dimension_numbers = #tpu.dot_dimension_numbers<[1], [0], [0], [1], [0, 0, 1, 1], [], []>} : vector<16x32xbf16>, vector<32x64xbf16>, vector<16x64xf32> -> vector<16x64xf32>
    %c2_60 = arith.constant 2 : index
    %c0_61 = arith.constant 0 : index
    %c0_62 = arith.constant 0 : index
    %114 = vector.load %arg5[%c2_60, %c0_61, %c0_62] : memref<12x1x64xf32, #tpu.memory_space<vmem>>, vector<1x1x64xf32>
    %115 = vector.shape_cast %114 : vector<1x1x64xf32> to vector<1x64xf32>
    %116 = vector.broadcast %115 : vector<1x64xf32> to vector<16x64xf32>
    %117 = arith.addf %113, %116 : vector<16x64xf32>
    %118 = vector.extract_strided_slice %117 {offsets = [0, 0], sizes = [16, 32], strides = [1, 1]} : vector<16x64xf32> to vector<16x32xf32>
    %119 = arith.negf %118 : vector<16x32xf32>
    %120 = math.exp %119 : vector<16x32xf32>
    %cst_63 = arith.constant 1.000000e+00 : f32
    %121 = vector.broadcast %cst_63 : f32 to vector<16x32xf32>
    %122 = arith.addf %121, %120 : vector<16x32xf32>
    %123 = arith.divf %121, %122 : vector<16x32xf32>
    %124 = vector.extract_strided_slice %117 {offsets = [0, 32], sizes = [16, 32], strides = [1, 1]} : vector<16x64xf32> to vector<16x32xf32>
    %125 = arith.subf %124, %109 : vector<16x32xf32>
    %126 = arith.mulf %123, %125 : vector<16x32xf32>
    %127 = arith.addf %109, %126 : vector<16x32xf32>
    %128 = arith.truncf %127 : vector<16x32xf32> to vector<16x32xbf16>
    %c3 = arith.constant 3 : index
    %c1_64 = arith.constant 1 : index
    %c0_65 = arith.constant 0 : index
    %c0_66 = arith.constant 0 : index
    %129 = vector.load %arg4[%c3, %c1_64, %c0_65, %c0_66] : memref<12x3x32x64xbf16, #tpu.memory_space<vmem>>, vector<1x1x32x64xbf16>
    %130 = vector.shape_cast %129 : vector<1x1x32x64xbf16> to vector<32x64xbf16>
    %cst_67 = arith.constant dense<0.000000e+00> : vector<16x64xf32>
    %131 = tpu.matmul %128, %130, %cst_67 {dimension_numbers = #tpu.dot_dimension_numbers<[1], [0], [0], [1], [0, 0, 1, 1], [], []>} : vector<16x32xbf16>, vector<32x64xbf16>, vector<16x64xf32> -> vector<16x64xf32>
    %c3_68 = arith.constant 3 : index
    %c0_69 = arith.constant 0 : index
    %c0_70 = arith.constant 0 : index
    %132 = vector.load %arg5[%c3_68, %c0_69, %c0_70] : memref<12x1x64xf32, #tpu.memory_space<vmem>>, vector<1x1x64xf32>
    %133 = vector.shape_cast %132 : vector<1x1x64xf32> to vector<1x64xf32>
    %134 = vector.broadcast %133 : vector<1x64xf32> to vector<16x64xf32>
    %135 = arith.addf %131, %134 : vector<16x64xf32>
    %136 = vector.extract_strided_slice %135 {offsets = [0, 0], sizes = [16, 32], strides = [1, 1]} : vector<16x64xf32> to vector<16x32xf32>
    %137 = arith.negf %136 : vector<16x32xf32>
    %138 = math.exp %137 : vector<16x32xf32>
    %cst_71 = arith.constant 1.000000e+00 : f32
    %139 = vector.broadcast %cst_71 : f32 to vector<16x32xf32>
    %140 = arith.addf %139, %138 : vector<16x32xf32>
    %141 = arith.divf %139, %140 : vector<16x32xf32>
    %142 = vector.extract_strided_slice %135 {offsets = [0, 32], sizes = [16, 32], strides = [1, 1]} : vector<16x64xf32> to vector<16x32xf32>
    %143 = arith.subf %142, %127 : vector<16x32xf32>
    %144 = arith.mulf %141, %143 : vector<16x32xf32>
    %145 = arith.addf %127, %144 : vector<16x32xf32>
    %146 = arith.truncf %145 : vector<16x32xf32> to vector<16x32xbf16>
    %c4 = arith.constant 4 : index
    %c1_72 = arith.constant 1 : index
    %c0_73 = arith.constant 0 : index
    %c0_74 = arith.constant 0 : index
    %147 = vector.load %arg4[%c4, %c1_72, %c0_73, %c0_74] : memref<12x3x32x64xbf16, #tpu.memory_space<vmem>>, vector<1x1x32x64xbf16>
    %148 = vector.shape_cast %147 : vector<1x1x32x64xbf16> to vector<32x64xbf16>
    %cst_75 = arith.constant dense<0.000000e+00> : vector<16x64xf32>
    %149 = tpu.matmul %146, %148, %cst_75 {dimension_numbers = #tpu.dot_dimension_numbers<[1], [0], [0], [1], [0, 0, 1, 1], [], []>} : vector<16x32xbf16>, vector<32x64xbf16>, vector<16x64xf32> -> vector<16x64xf32>
    %c1_i32_76 = arith.constant 1 : i32
    %150 = tpu.dynamic_rotate %145 by %c1_i32_76 dim 0 : vector<16x32xf32>, i32 -> vector<16x32xf32>
    %c1_i32_77 = arith.constant 1 : i32
    %151 = vector.broadcast %c1_i32_77 : i32 to vector<16x32xi32>
    %152 = arith.cmpi sge, %33, %151 : vector<16x32xi32>
    %cst_78 = arith.constant 0.000000e+00 : f32
    %153 = vector.broadcast %cst_78 : f32 to vector<16x32xf32>
    %154 = arith.select %152, %150, %153 : vector<16x32xi1>, vector<16x32xf32>
    %155 = arith.truncf %154 : vector<16x32xf32> to vector<16x32xbf16>
    %c4_79 = arith.constant 4 : index
    %c0_80 = arith.constant 0 : index
    %c0_81 = arith.constant 0 : index
    %c0_82 = arith.constant 0 : index
    %156 = vector.load %arg4[%c4_79, %c0_80, %c0_81, %c0_82] : memref<12x3x32x64xbf16, #tpu.memory_space<vmem>>, vector<1x1x32x64xbf16>
    %157 = vector.shape_cast %156 : vector<1x1x32x64xbf16> to vector<32x64xbf16>
    %cst_83 = arith.constant dense<0.000000e+00> : vector<16x64xf32>
    %158 = tpu.matmul %155, %157, %cst_83 {dimension_numbers = #tpu.dot_dimension_numbers<[1], [0], [0], [1], [0, 0, 1, 1], [], []>} : vector<16x32xbf16>, vector<32x64xbf16>, vector<16x64xf32> -> vector<16x64xf32>
    %159 = arith.addf %149, %158 : vector<16x64xf32>
    %c15_i32_84 = arith.constant 15 : i32
    %160 = tpu.dynamic_rotate %145 by %c15_i32_84 dim 0 : vector<16x32xf32>, i32 -> vector<16x32xf32>
    %c7_i32_85 = arith.constant 7 : i32
    %161 = vector.broadcast %c7_i32_85 : i32 to vector<16x32xi32>
    %162 = arith.cmpi slt, %33, %161 : vector<16x32xi32>
    %cst_86 = arith.constant 0.000000e+00 : f32
    %163 = vector.broadcast %cst_86 : f32 to vector<16x32xf32>
    %164 = arith.select %162, %160, %163 : vector<16x32xi1>, vector<16x32xf32>
    %165 = arith.truncf %164 : vector<16x32xf32> to vector<16x32xbf16>
    %c4_87 = arith.constant 4 : index
    %c2_88 = arith.constant 2 : index
    %c0_89 = arith.constant 0 : index
    %c0_90 = arith.constant 0 : index
    %166 = vector.load %arg4[%c4_87, %c2_88, %c0_89, %c0_90] : memref<12x3x32x64xbf16, #tpu.memory_space<vmem>>, vector<1x1x32x64xbf16>
    %167 = vector.shape_cast %166 : vector<1x1x32x64xbf16> to vector<32x64xbf16>
    %cst_91 = arith.constant dense<0.000000e+00> : vector<16x64xf32>
    %168 = tpu.matmul %165, %167, %cst_91 {dimension_numbers = #tpu.dot_dimension_numbers<[1], [0], [0], [1], [0, 0, 1, 1], [], []>} : vector<16x32xbf16>, vector<32x64xbf16>, vector<16x64xf32> -> vector<16x64xf32>
    %169 = arith.addf %159, %168 : vector<16x64xf32>
    %c4_92 = arith.constant 4 : index
    %c0_93 = arith.constant 0 : index
    %c0_94 = arith.constant 0 : index
    %170 = vector.load %arg5[%c4_92, %c0_93, %c0_94] : memref<12x1x64xf32, #tpu.memory_space<vmem>>, vector<1x1x64xf32>
    %171 = vector.shape_cast %170 : vector<1x1x64xf32> to vector<1x64xf32>
    %172 = vector.broadcast %171 : vector<1x64xf32> to vector<16x64xf32>
    %173 = arith.addf %169, %172 : vector<16x64xf32>
    %174 = vector.extract_strided_slice %173 {offsets = [0, 0], sizes = [16, 32], strides = [1, 1]} : vector<16x64xf32> to vector<16x32xf32>
    %175 = arith.negf %174 : vector<16x32xf32>
    %176 = math.exp %175 : vector<16x32xf32>
    %cst_95 = arith.constant 1.000000e+00 : f32
    %177 = vector.broadcast %cst_95 : f32 to vector<16x32xf32>
    %178 = arith.addf %177, %176 : vector<16x32xf32>
    %179 = arith.divf %177, %178 : vector<16x32xf32>
    %180 = vector.extract_strided_slice %173 {offsets = [0, 32], sizes = [16, 32], strides = [1, 1]} : vector<16x64xf32> to vector<16x32xf32>
    %181 = arith.subf %180, %145 : vector<16x32xf32>
    %182 = arith.mulf %179, %181 : vector<16x32xf32>
    %183 = arith.addf %145, %182 : vector<16x32xf32>
    %184 = arith.truncf %183 : vector<16x32xf32> to vector<16x32xbf16>
    %c5 = arith.constant 5 : index
    %c1_96 = arith.constant 1 : index
    %c0_97 = arith.constant 0 : index
    %c0_98 = arith.constant 0 : index
    %185 = vector.load %arg4[%c5, %c1_96, %c0_97, %c0_98] : memref<12x3x32x64xbf16, #tpu.memory_space<vmem>>, vector<1x1x32x64xbf16>
    %186 = vector.shape_cast %185 : vector<1x1x32x64xbf16> to vector<32x64xbf16>
    %cst_99 = arith.constant dense<0.000000e+00> : vector<16x64xf32>
    %187 = tpu.matmul %184, %186, %cst_99 {dimension_numbers = #tpu.dot_dimension_numbers<[1], [0], [0], [1], [0, 0, 1, 1], [], []>} : vector<16x32xbf16>, vector<32x64xbf16>, vector<16x64xf32> -> vector<16x64xf32>
    %c3_i32_100 = arith.constant 3 : i32
    %188 = tpu.dynamic_rotate %183 by %c3_i32_100 dim 0 : vector<16x32xf32>, i32 -> vector<16x32xf32>
    %c3_i32_101 = arith.constant 3 : i32
    %189 = vector.broadcast %c3_i32_101 : i32 to vector<16x32xi32>
    %190 = arith.cmpi sge, %33, %189 : vector<16x32xi32>
    %cst_102 = arith.constant 0.000000e+00 : f32
    %191 = vector.broadcast %cst_102 : f32 to vector<16x32xf32>
    %192 = arith.select %190, %188, %191 : vector<16x32xi1>, vector<16x32xf32>
    %193 = arith.truncf %192 : vector<16x32xf32> to vector<16x32xbf16>
    %c5_103 = arith.constant 5 : index
    %c0_104 = arith.constant 0 : index
    %c0_105 = arith.constant 0 : index
    %c0_106 = arith.constant 0 : index
    %194 = vector.load %arg4[%c5_103, %c0_104, %c0_105, %c0_106] : memref<12x3x32x64xbf16, #tpu.memory_space<vmem>>, vector<1x1x32x64xbf16>
    %195 = vector.shape_cast %194 : vector<1x1x32x64xbf16> to vector<32x64xbf16>
    %cst_107 = arith.constant dense<0.000000e+00> : vector<16x64xf32>
    %196 = tpu.matmul %193, %195, %cst_107 {dimension_numbers = #tpu.dot_dimension_numbers<[1], [0], [0], [1], [0, 0, 1, 1], [], []>} : vector<16x32xbf16>, vector<32x64xbf16>, vector<16x64xf32> -> vector<16x64xf32>
    %197 = arith.addf %187, %196 : vector<16x64xf32>
    %c13_i32_108 = arith.constant 13 : i32
    %198 = tpu.dynamic_rotate %183 by %c13_i32_108 dim 0 : vector<16x32xf32>, i32 -> vector<16x32xf32>
    %c5_i32_109 = arith.constant 5 : i32
    %199 = vector.broadcast %c5_i32_109 : i32 to vector<16x32xi32>
    %200 = arith.cmpi slt, %33, %199 : vector<16x32xi32>
    %cst_110 = arith.constant 0.000000e+00 : f32
    %201 = vector.broadcast %cst_110 : f32 to vector<16x32xf32>
    %202 = arith.select %200, %198, %201 : vector<16x32xi1>, vector<16x32xf32>
    %203 = arith.truncf %202 : vector<16x32xf32> to vector<16x32xbf16>
    %c5_111 = arith.constant 5 : index
    %c2_112 = arith.constant 2 : index
    %c0_113 = arith.constant 0 : index
    %c0_114 = arith.constant 0 : index
    %204 = vector.load %arg4[%c5_111, %c2_112, %c0_113, %c0_114] : memref<12x3x32x64xbf16, #tpu.memory_space<vmem>>, vector<1x1x32x64xbf16>
    %205 = vector.shape_cast %204 : vector<1x1x32x64xbf16> to vector<32x64xbf16>
    %cst_115 = arith.constant dense<0.000000e+00> : vector<16x64xf32>
    %206 = tpu.matmul %203, %205, %cst_115 {dimension_numbers = #tpu.dot_dimension_numbers<[1], [0], [0], [1], [0, 0, 1, 1], [], []>} : vector<16x32xbf16>, vector<32x64xbf16>, vector<16x64xf32> -> vector<16x64xf32>
    %207 = arith.addf %197, %206 : vector<16x64xf32>
    %c5_116 = arith.constant 5 : index
    %c0_117 = arith.constant 0 : index
    %c0_118 = arith.constant 0 : index
    %208 = vector.load %arg5[%c5_116, %c0_117, %c0_118] : memref<12x1x64xf32, #tpu.memory_space<vmem>>, vector<1x1x64xf32>
    %209 = vector.shape_cast %208 : vector<1x1x64xf32> to vector<1x64xf32>
    %210 = vector.broadcast %209 : vector<1x64xf32> to vector<16x64xf32>
    %211 = arith.addf %207, %210 : vector<16x64xf32>
    %212 = vector.extract_strided_slice %211 {offsets = [0, 0], sizes = [16, 32], strides = [1, 1]} : vector<16x64xf32> to vector<16x32xf32>
    %213 = arith.negf %212 : vector<16x32xf32>
    %214 = math.exp %213 : vector<16x32xf32>
    %cst_119 = arith.constant 1.000000e+00 : f32
    %215 = vector.broadcast %cst_119 : f32 to vector<16x32xf32>
    %216 = arith.addf %215, %214 : vector<16x32xf32>
    %217 = arith.divf %215, %216 : vector<16x32xf32>
    %218 = vector.extract_strided_slice %211 {offsets = [0, 32], sizes = [16, 32], strides = [1, 1]} : vector<16x64xf32> to vector<16x32xf32>
    %219 = arith.subf %218, %183 : vector<16x32xf32>
    %220 = arith.mulf %217, %219 : vector<16x32xf32>
    %221 = arith.addf %183, %220 : vector<16x32xf32>
    %222 = arith.truncf %221 : vector<16x32xf32> to vector<16x32xbf16>
    %c6 = arith.constant 6 : index
    %c1_120 = arith.constant 1 : index
    %c0_121 = arith.constant 0 : index
    %c0_122 = arith.constant 0 : index
    %223 = vector.load %arg4[%c6, %c1_120, %c0_121, %c0_122] : memref<12x3x32x64xbf16, #tpu.memory_space<vmem>>, vector<1x1x32x64xbf16>
    %224 = vector.shape_cast %223 : vector<1x1x32x64xbf16> to vector<32x64xbf16>
    %cst_123 = arith.constant dense<0.000000e+00> : vector<16x64xf32>
    %225 = tpu.matmul %222, %224, %cst_123 {dimension_numbers = #tpu.dot_dimension_numbers<[1], [0], [0], [1], [0, 0, 1, 1], [], []>} : vector<16x32xbf16>, vector<32x64xbf16>, vector<16x64xf32> -> vector<16x64xf32>
    %c6_124 = arith.constant 6 : index
    %c0_125 = arith.constant 0 : index
    %c0_126 = arith.constant 0 : index
    %226 = vector.load %arg5[%c6_124, %c0_125, %c0_126] : memref<12x1x64xf32, #tpu.memory_space<vmem>>, vector<1x1x64xf32>
    %227 = vector.shape_cast %226 : vector<1x1x64xf32> to vector<1x64xf32>
    %228 = vector.broadcast %227 : vector<1x64xf32> to vector<16x64xf32>
    %229 = arith.addf %225, %228 : vector<16x64xf32>
    %230 = vector.extract_strided_slice %229 {offsets = [0, 0], sizes = [16, 32], strides = [1, 1]} : vector<16x64xf32> to vector<16x32xf32>
    %231 = arith.negf %230 : vector<16x32xf32>
    %232 = math.exp %231 : vector<16x32xf32>
    %cst_127 = arith.constant 1.000000e+00 : f32
    %233 = vector.broadcast %cst_127 : f32 to vector<16x32xf32>
    %234 = arith.addf %233, %232 : vector<16x32xf32>
    %235 = arith.divf %233, %234 : vector<16x32xf32>
    %236 = vector.extract_strided_slice %229 {offsets = [0, 32], sizes = [16, 32], strides = [1, 1]} : vector<16x64xf32> to vector<16x32xf32>
    %237 = arith.subf %236, %221 : vector<16x32xf32>
    %238 = arith.mulf %235, %237 : vector<16x32xf32>
    %239 = arith.addf %221, %238 : vector<16x32xf32>
    %240 = arith.truncf %239 : vector<16x32xf32> to vector<16x32xbf16>
    %c7 = arith.constant 7 : index
    %c1_128 = arith.constant 1 : index
    %c0_129 = arith.constant 0 : index
    %c0_130 = arith.constant 0 : index
    %241 = vector.load %arg4[%c7, %c1_128, %c0_129, %c0_130] : memref<12x3x32x64xbf16, #tpu.memory_space<vmem>>, vector<1x1x32x64xbf16>
    %242 = vector.shape_cast %241 : vector<1x1x32x64xbf16> to vector<32x64xbf16>
    %cst_131 = arith.constant dense<0.000000e+00> : vector<16x64xf32>
    %243 = tpu.matmul %240, %242, %cst_131 {dimension_numbers = #tpu.dot_dimension_numbers<[1], [0], [0], [1], [0, 0, 1, 1], [], []>} : vector<16x32xbf16>, vector<32x64xbf16>, vector<16x64xf32> -> vector<16x64xf32>
    %c7_132 = arith.constant 7 : index
    %c0_133 = arith.constant 0 : index
    %c0_134 = arith.constant 0 : index
    %244 = vector.load %arg5[%c7_132, %c0_133, %c0_134] : memref<12x1x64xf32, #tpu.memory_space<vmem>>, vector<1x1x64xf32>
    %245 = vector.shape_cast %244 : vector<1x1x64xf32> to vector<1x64xf32>
    %246 = vector.broadcast %245 : vector<1x64xf32> to vector<16x64xf32>
    %247 = arith.addf %243, %246 : vector<16x64xf32>
    %248 = vector.extract_strided_slice %247 {offsets = [0, 0], sizes = [16, 32], strides = [1, 1]} : vector<16x64xf32> to vector<16x32xf32>
    %249 = arith.negf %248 : vector<16x32xf32>
    %250 = math.exp %249 : vector<16x32xf32>
    %cst_135 = arith.constant 1.000000e+00 : f32
    %251 = vector.broadcast %cst_135 : f32 to vector<16x32xf32>
    %252 = arith.addf %251, %250 : vector<16x32xf32>
    %253 = arith.divf %251, %252 : vector<16x32xf32>
    %254 = vector.extract_strided_slice %247 {offsets = [0, 32], sizes = [16, 32], strides = [1, 1]} : vector<16x64xf32> to vector<16x32xf32>
    %255 = arith.subf %254, %239 : vector<16x32xf32>
    %256 = arith.mulf %253, %255 : vector<16x32xf32>
    %257 = arith.addf %239, %256 : vector<16x32xf32>
    %258 = arith.truncf %257 : vector<16x32xf32> to vector<16x32xbf16>
    %c8 = arith.constant 8 : index
    %c1_136 = arith.constant 1 : index
    %c0_137 = arith.constant 0 : index
    %c0_138 = arith.constant 0 : index
    %259 = vector.load %arg4[%c8, %c1_136, %c0_137, %c0_138] : memref<12x3x32x64xbf16, #tpu.memory_space<vmem>>, vector<1x1x32x64xbf16>
    %260 = vector.shape_cast %259 : vector<1x1x32x64xbf16> to vector<32x64xbf16>
    %cst_139 = arith.constant dense<0.000000e+00> : vector<16x64xf32>
    %261 = tpu.matmul %258, %260, %cst_139 {dimension_numbers = #tpu.dot_dimension_numbers<[1], [0], [0], [1], [0, 0, 1, 1], [], []>} : vector<16x32xbf16>, vector<32x64xbf16>, vector<16x64xf32> -> vector<16x64xf32>
    %c1_i32_140 = arith.constant 1 : i32
    %262 = tpu.dynamic_rotate %257 by %c1_i32_140 dim 0 : vector<16x32xf32>, i32 -> vector<16x32xf32>
    %c1_i32_141 = arith.constant 1 : i32
    %263 = vector.broadcast %c1_i32_141 : i32 to vector<16x32xi32>
    %264 = arith.cmpi sge, %33, %263 : vector<16x32xi32>
    %cst_142 = arith.constant 0.000000e+00 : f32
    %265 = vector.broadcast %cst_142 : f32 to vector<16x32xf32>
    %266 = arith.select %264, %262, %265 : vector<16x32xi1>, vector<16x32xf32>
    %267 = arith.truncf %266 : vector<16x32xf32> to vector<16x32xbf16>
    %c8_143 = arith.constant 8 : index
    %c0_144 = arith.constant 0 : index
    %c0_145 = arith.constant 0 : index
    %c0_146 = arith.constant 0 : index
    %268 = vector.load %arg4[%c8_143, %c0_144, %c0_145, %c0_146] : memref<12x3x32x64xbf16, #tpu.memory_space<vmem>>, vector<1x1x32x64xbf16>
    %269 = vector.shape_cast %268 : vector<1x1x32x64xbf16> to vector<32x64xbf16>
    %cst_147 = arith.constant dense<0.000000e+00> : vector<16x64xf32>
    %270 = tpu.matmul %267, %269, %cst_147 {dimension_numbers = #tpu.dot_dimension_numbers<[1], [0], [0], [1], [0, 0, 1, 1], [], []>} : vector<16x32xbf16>, vector<32x64xbf16>, vector<16x64xf32> -> vector<16x64xf32>
    %271 = arith.addf %261, %270 : vector<16x64xf32>
    %c15_i32_148 = arith.constant 15 : i32
    %272 = tpu.dynamic_rotate %257 by %c15_i32_148 dim 0 : vector<16x32xf32>, i32 -> vector<16x32xf32>
    %c7_i32_149 = arith.constant 7 : i32
    %273 = vector.broadcast %c7_i32_149 : i32 to vector<16x32xi32>
    %274 = arith.cmpi slt, %33, %273 : vector<16x32xi32>
    %cst_150 = arith.constant 0.000000e+00 : f32
    %275 = vector.broadcast %cst_150 : f32 to vector<16x32xf32>
    %276 = arith.select %274, %272, %275 : vector<16x32xi1>, vector<16x32xf32>
    %277 = arith.truncf %276 : vector<16x32xf32> to vector<16x32xbf16>
    %c8_151 = arith.constant 8 : index
    %c2_152 = arith.constant 2 : index
    %c0_153 = arith.constant 0 : index
    %c0_154 = arith.constant 0 : index
    %278 = vector.load %arg4[%c8_151, %c2_152, %c0_153, %c0_154] : memref<12x3x32x64xbf16, #tpu.memory_space<vmem>>, vector<1x1x32x64xbf16>
    %279 = vector.shape_cast %278 : vector<1x1x32x64xbf16> to vector<32x64xbf16>
    %cst_155 = arith.constant dense<0.000000e+00> : vector<16x64xf32>
    %280 = tpu.matmul %277, %279, %cst_155 {dimension_numbers = #tpu.dot_dimension_numbers<[1], [0], [0], [1], [0, 0, 1, 1], [], []>} : vector<16x32xbf16>, vector<32x64xbf16>, vector<16x64xf32> -> vector<16x64xf32>
    %281 = arith.addf %271, %280 : vector<16x64xf32>
    %c8_156 = arith.constant 8 : index
    %c0_157 = arith.constant 0 : index
    %c0_158 = arith.constant 0 : index
    %282 = vector.load %arg5[%c8_156, %c0_157, %c0_158] : memref<12x1x64xf32, #tpu.memory_space<vmem>>, vector<1x1x64xf32>
    %283 = vector.shape_cast %282 : vector<1x1x64xf32> to vector<1x64xf32>
    %284 = vector.broadcast %283 : vector<1x64xf32> to vector<16x64xf32>
    %285 = arith.addf %281, %284 : vector<16x64xf32>
    %286 = vector.extract_strided_slice %285 {offsets = [0, 0], sizes = [16, 32], strides = [1, 1]} : vector<16x64xf32> to vector<16x32xf32>
    %287 = arith.negf %286 : vector<16x32xf32>
    %288 = math.exp %287 : vector<16x32xf32>
    %cst_159 = arith.constant 1.000000e+00 : f32
    %289 = vector.broadcast %cst_159 : f32 to vector<16x32xf32>
    %290 = arith.addf %289, %288 : vector<16x32xf32>
    %291 = arith.divf %289, %290 : vector<16x32xf32>
    %292 = vector.extract_strided_slice %285 {offsets = [0, 32], sizes = [16, 32], strides = [1, 1]} : vector<16x64xf32> to vector<16x32xf32>
    %293 = arith.subf %292, %257 : vector<16x32xf32>
    %294 = arith.mulf %291, %293 : vector<16x32xf32>
    %295 = arith.addf %257, %294 : vector<16x32xf32>
    %296 = arith.truncf %295 : vector<16x32xf32> to vector<16x32xbf16>
    %c9 = arith.constant 9 : index
    %c1_160 = arith.constant 1 : index
    %c0_161 = arith.constant 0 : index
    %c0_162 = arith.constant 0 : index
    %297 = vector.load %arg4[%c9, %c1_160, %c0_161, %c0_162] : memref<12x3x32x64xbf16, #tpu.memory_space<vmem>>, vector<1x1x32x64xbf16>
    %298 = vector.shape_cast %297 : vector<1x1x32x64xbf16> to vector<32x64xbf16>
    %cst_163 = arith.constant dense<0.000000e+00> : vector<16x64xf32>
    %299 = tpu.matmul %296, %298, %cst_163 {dimension_numbers = #tpu.dot_dimension_numbers<[1], [0], [0], [1], [0, 0, 1, 1], [], []>} : vector<16x32xbf16>, vector<32x64xbf16>, vector<16x64xf32> -> vector<16x64xf32>
    %c1_i32_164 = arith.constant 1 : i32
    %300 = tpu.dynamic_rotate %295 by %c1_i32_164 dim 0 : vector<16x32xf32>, i32 -> vector<16x32xf32>
    %c1_i32_165 = arith.constant 1 : i32
    %301 = vector.broadcast %c1_i32_165 : i32 to vector<16x32xi32>
    %302 = arith.cmpi sge, %33, %301 : vector<16x32xi32>
    %cst_166 = arith.constant 0.000000e+00 : f32
    %303 = vector.broadcast %cst_166 : f32 to vector<16x32xf32>
    %304 = arith.select %302, %300, %303 : vector<16x32xi1>, vector<16x32xf32>
    %305 = arith.truncf %304 : vector<16x32xf32> to vector<16x32xbf16>
    %c9_167 = arith.constant 9 : index
    %c0_168 = arith.constant 0 : index
    %c0_169 = arith.constant 0 : index
    %c0_170 = arith.constant 0 : index
    %306 = vector.load %arg4[%c9_167, %c0_168, %c0_169, %c0_170] : memref<12x3x32x64xbf16, #tpu.memory_space<vmem>>, vector<1x1x32x64xbf16>
    %307 = vector.shape_cast %306 : vector<1x1x32x64xbf16> to vector<32x64xbf16>
    %cst_171 = arith.constant dense<0.000000e+00> : vector<16x64xf32>
    %308 = tpu.matmul %305, %307, %cst_171 {dimension_numbers = #tpu.dot_dimension_numbers<[1], [0], [0], [1], [0, 0, 1, 1], [], []>} : vector<16x32xbf16>, vector<32x64xbf16>, vector<16x64xf32> -> vector<16x64xf32>
    %309 = arith.addf %299, %308 : vector<16x64xf32>
    %c15_i32_172 = arith.constant 15 : i32
    %310 = tpu.dynamic_rotate %295 by %c15_i32_172 dim 0 : vector<16x32xf32>, i32 -> vector<16x32xf32>
    %c7_i32_173 = arith.constant 7 : i32
    %311 = vector.broadcast %c7_i32_173 : i32 to vector<16x32xi32>
    %312 = arith.cmpi slt, %33, %311 : vector<16x32xi32>
    %cst_174 = arith.constant 0.000000e+00 : f32
    %313 = vector.broadcast %cst_174 : f32 to vector<16x32xf32>
    %314 = arith.select %312, %310, %313 : vector<16x32xi1>, vector<16x32xf32>
    %315 = arith.truncf %314 : vector<16x32xf32> to vector<16x32xbf16>
    %c9_175 = arith.constant 9 : index
    %c2_176 = arith.constant 2 : index
    %c0_177 = arith.constant 0 : index
    %c0_178 = arith.constant 0 : index
    %316 = vector.load %arg4[%c9_175, %c2_176, %c0_177, %c0_178] : memref<12x3x32x64xbf16, #tpu.memory_space<vmem>>, vector<1x1x32x64xbf16>
    %317 = vector.shape_cast %316 : vector<1x1x32x64xbf16> to vector<32x64xbf16>
    %cst_179 = arith.constant dense<0.000000e+00> : vector<16x64xf32>
    %318 = tpu.matmul %315, %317, %cst_179 {dimension_numbers = #tpu.dot_dimension_numbers<[1], [0], [0], [1], [0, 0, 1, 1], [], []>} : vector<16x32xbf16>, vector<32x64xbf16>, vector<16x64xf32> -> vector<16x64xf32>
    %319 = arith.addf %309, %318 : vector<16x64xf32>
    %c9_180 = arith.constant 9 : index
    %c0_181 = arith.constant 0 : index
    %c0_182 = arith.constant 0 : index
    %320 = vector.load %arg5[%c9_180, %c0_181, %c0_182] : memref<12x1x64xf32, #tpu.memory_space<vmem>>, vector<1x1x64xf32>
    %321 = vector.shape_cast %320 : vector<1x1x64xf32> to vector<1x64xf32>
    %322 = vector.broadcast %321 : vector<1x64xf32> to vector<16x64xf32>
    %323 = arith.addf %319, %322 : vector<16x64xf32>
    %324 = vector.extract_strided_slice %323 {offsets = [0, 0], sizes = [16, 32], strides = [1, 1]} : vector<16x64xf32> to vector<16x32xf32>
    %325 = arith.negf %324 : vector<16x32xf32>
    %326 = math.exp %325 : vector<16x32xf32>
    %cst_183 = arith.constant 1.000000e+00 : f32
    %327 = vector.broadcast %cst_183 : f32 to vector<16x32xf32>
    %328 = arith.addf %327, %326 : vector<16x32xf32>
    %329 = arith.divf %327, %328 : vector<16x32xf32>
    %330 = vector.extract_strided_slice %323 {offsets = [0, 32], sizes = [16, 32], strides = [1, 1]} : vector<16x64xf32> to vector<16x32xf32>
    %331 = arith.subf %330, %295 : vector<16x32xf32>
    %332 = arith.mulf %329, %331 : vector<16x32xf32>
    %333 = arith.addf %295, %332 : vector<16x32xf32>
    %334 = arith.truncf %333 : vector<16x32xf32> to vector<16x32xbf16>
    %c10 = arith.constant 10 : index
    %c1_184 = arith.constant 1 : index
    %c0_185 = arith.constant 0 : index
    %c0_186 = arith.constant 0 : index
    %335 = vector.load %arg4[%c10, %c1_184, %c0_185, %c0_186] : memref<12x3x32x64xbf16, #tpu.memory_space<vmem>>, vector<1x1x32x64xbf16>
    %336 = vector.shape_cast %335 : vector<1x1x32x64xbf16> to vector<32x64xbf16>
    %cst_187 = arith.constant dense<0.000000e+00> : vector<16x64xf32>
    %337 = tpu.matmul %334, %336, %cst_187 {dimension_numbers = #tpu.dot_dimension_numbers<[1], [0], [0], [1], [0, 0, 1, 1], [], []>} : vector<16x32xbf16>, vector<32x64xbf16>, vector<16x64xf32> -> vector<16x64xf32>
    %c10_188 = arith.constant 10 : index
    %c0_189 = arith.constant 0 : index
    %c0_190 = arith.constant 0 : index
    %338 = vector.load %arg5[%c10_188, %c0_189, %c0_190] : memref<12x1x64xf32, #tpu.memory_space<vmem>>, vector<1x1x64xf32>
    %339 = vector.shape_cast %338 : vector<1x1x64xf32> to vector<1x64xf32>
    %340 = vector.broadcast %339 : vector<1x64xf32> to vector<16x64xf32>
    %341 = arith.addf %337, %340 : vector<16x64xf32>
    %342 = vector.extract_strided_slice %341 {offsets = [0, 0], sizes = [16, 32], strides = [1, 1]} : vector<16x64xf32> to vector<16x32xf32>
    %343 = arith.negf %342 : vector<16x32xf32>
    %344 = math.exp %343 : vector<16x32xf32>
    %cst_191 = arith.constant 1.000000e+00 : f32
    %345 = vector.broadcast %cst_191 : f32 to vector<16x32xf32>
    %346 = arith.addf %345, %344 : vector<16x32xf32>
    %347 = arith.divf %345, %346 : vector<16x32xf32>
    %348 = vector.extract_strided_slice %341 {offsets = [0, 32], sizes = [16, 32], strides = [1, 1]} : vector<16x64xf32> to vector<16x32xf32>
    %349 = arith.subf %348, %333 : vector<16x32xf32>
    %350 = arith.mulf %347, %349 : vector<16x32xf32>
    %351 = arith.addf %333, %350 : vector<16x32xf32>
    %352 = arith.truncf %351 : vector<16x32xf32> to vector<16x32xbf16>
    %c11 = arith.constant 11 : index
    %c1_192 = arith.constant 1 : index
    %c0_193 = arith.constant 0 : index
    %c0_194 = arith.constant 0 : index
    %353 = vector.load %arg4[%c11, %c1_192, %c0_193, %c0_194] : memref<12x3x32x64xbf16, #tpu.memory_space<vmem>>, vector<1x1x32x64xbf16>
    %354 = vector.shape_cast %353 : vector<1x1x32x64xbf16> to vector<32x64xbf16>
    %cst_195 = arith.constant dense<0.000000e+00> : vector<16x64xf32>
    %355 = tpu.matmul %352, %354, %cst_195 {dimension_numbers = #tpu.dot_dimension_numbers<[1], [0], [0], [1], [0, 0, 1, 1], [], []>} : vector<16x32xbf16>, vector<32x64xbf16>, vector<16x64xf32> -> vector<16x64xf32>
    %c11_196 = arith.constant 11 : index
    %c0_197 = arith.constant 0 : index
    %c0_198 = arith.constant 0 : index
    %356 = vector.load %arg5[%c11_196, %c0_197, %c0_198] : memref<12x1x64xf32, #tpu.memory_space<vmem>>, vector<1x1x64xf32>
    %357 = vector.shape_cast %356 : vector<1x1x64xf32> to vector<1x64xf32>
    %358 = vector.broadcast %357 : vector<1x64xf32> to vector<16x64xf32>
    %359 = arith.addf %355, %358 : vector<16x64xf32>
    %360 = vector.extract_strided_slice %359 {offsets = [0, 0], sizes = [16, 32], strides = [1, 1]} : vector<16x64xf32> to vector<16x32xf32>
    %361 = arith.negf %360 : vector<16x32xf32>
    %362 = math.exp %361 : vector<16x32xf32>
    %cst_199 = arith.constant 1.000000e+00 : f32
    %363 = vector.broadcast %cst_199 : f32 to vector<16x32xf32>
    %364 = arith.addf %363, %362 : vector<16x32xf32>
    %365 = arith.divf %363, %364 : vector<16x32xf32>
    %366 = vector.extract_strided_slice %359 {offsets = [0, 32], sizes = [16, 32], strides = [1, 1]} : vector<16x64xf32> to vector<16x32xf32>
    %367 = arith.subf %366, %351 : vector<16x32xf32>
    %368 = arith.mulf %365, %367 : vector<16x32xf32>
    %369 = arith.addf %351, %368 : vector<16x32xf32>
    %370 = vector.shape_cast %369 : vector<16x32xf32> to vector<2x8x32xf32>
    %c0_200 = arith.constant 0 : index
    %c0_201 = arith.constant 0 : index
    %c0_202 = arith.constant 0 : index
    %371 = vector.load %arg6[%c0_200, %c0_201, %c0_202] : memref<2x8x32xf32, #tpu.memory_space<vmem>>, vector<2x8x32xf32>
    tpu.vector_store %arg6[%c0_200, %c0_201, %c0_202], %370 {strides = array<i32>} : memref<2x8x32xf32, #tpu.memory_space<vmem>>, vector<2x8x32xf32>,
    return
  }
}

</mosaic_0001>

<bundles_post_ra>
// kernel: text_enc.1
= control target key start
LH: loop header
LB: loop body
LE: loop exit
PB: predicated region body
PF: predicated region fallthrough
CT: control target
= control target key end

     0   :  { %11 = vsyncpa [#allocation3], 0  ;;  %s2938_s21 = smov [#allocation2]   ;;  %s3436_s0 = inlined_call_operand.vmem [shape: s32[16,1], index: 0, kind: input, shape index: {}]   ;;  %s3437_s1 = inlined_call_operand.vmem [shape: bf16[64,32], index: 1, kind: input, shape index: {}]   ;;  %s3438_s2 = inlined_call_operand.vmem [shape: bf16[32,32], index: 2, kind: input, shape index: {}]   ;;  %s3439_s3 = inlined_call_operand.vmem [shape: f32[1,32], index: 3, kind: input, shape index: {}]   ;;  %s3440_s4 = inlined_call_operand.hbm [shape: bf16[12,3,32,64], index: 4, kind: input, shape index: {}]   ;;  %s3441_s5 = inlined_call_operand.vmem [shape: f32[12,1,64], index: 5, kind: input, shape index: {}]   ;;  %s3442_s6 = inlined_call_operand.vmem [shape: f32[2,8,32], index: 6, kind: output, shape index: {}]  }
   0x1   :  { %s25_s22 = sshll.u32 %s2938_s21, 4  ;;  %s26_s22 = int_to_ptr.vmem [resolvable:$true] %s25_s22 }
   0x2   :  { %s2924_s23 = scalar_lea.vmem %s26_s22, 9216  ;;  %p2929_p1 = scmp.lt.s32.totalorder %s26_s22, %s26_s22 }
   0x3   :  { %p2925_p0 = scmp.ne.s32.totalorder %s26_s22, %s2924_s23  ;;  %p2930_p2 = scmp.lt.s32.totalorder %s2924_s23, %s2924_s23 }
   0x5   :  { %p2931_p3 = por %p2930_p2, %p2929_p1 }
   0x7   :  { %p2932_p4 = pnand %p2931_p3, %p2925_p0 }
   0x9   :  { %2935 = shalt.err (!%p2932_p4)
}
   0xa   :  { %s2939_s24 = smov 64   ;;  %s2940_s25 = smov 4  }
   0xb   :  { %31 = dma.hbm_to_vmem [thread:$0]  %s3440_s4, 9216, %s26_s22, [#allocation3], %s2939_s24, %s2939_s24, %s2940_s25  }
   0xc   :  { %2936 = dma.done.wait [#allocation3], 9216  }
   0xd   :  { %2937 = vsyncadd [#allocation3], 4294958080  ;;  %v2941_v0 = vmov 0   ;;  %v2942_v1 = vmov 0.0   ;;  %v38_v2 = vld [vmem:[%s3436_s0] sm:$0xff]  ;;  %v2766_v3 = vld [vmem:[%s3437_s1 + $0x18] sm:$0xff]   ;;  %v40_v8 = vlaneseq }
   0xe   :  { %2765 = vset.pattern.permute.xlu0 %v2941_v0  ;;  %2545 = vmatprep.subr.bf16.mxu0 %v2942_v1  ;;  %v39_v4 = vld [vmem:[%s3436_s0 + $0x8] sm:$0xff]  ;;  %v2767_v5 = vld [vmem:[%s3437_s1 + $0x10] sm:$0xff]   ;;  %vm2943_vm0 = vmmov 0   ;;  %v2769_v7 = vld [vmem:[%s3437_s1] sm:$0xff]   ;;  %vm87_vm3 = vcmask 523264   ;;  %vm158_vm4 = vcmask 261120  }
   0xf   :  { %2557 = vmatprep.subr.bf16.mxu1 %v2942_v1  ;;  %43 = vperm.xlu0 %2765, %v38_v2   ;;  %v2768_v6 = vld [vmem:[%s3437_s1 + $0x8] sm:$0xff]   ;;  %v41_v9 = vand.u32 127, %v40_v8  ;;  %v2771_v16 = vld [vmem:[%s3438_s2] sm:$0xff]   ;;  %v2772_v24 = vld [vmem:[#allocation2 + $0x18] sm:$0xff]   ;;  %v3031_v28 = vshrl.u32 %v40_v8, 7  ;;  %s2944_s18 = smov 32  }
  0x10   :  { %2546 = vmatpush3.bf16.msra.mxu0 %v2766_v3  ;;  %2553 = vmatprep.mubr.msk.bf16.mxu0 %vm2943_vm0, %v2942_v1  ;;  %v2770_v15 = vld [vmem:[%s3438_s2 + $0x8] sm:$0xff]   ;;  %v2774_v26 = vld [vmem:[#allocation2 + $0x10] sm:$0xff]   ;;  %v2775_v27 = vld [vmem:[#allocation2] sm:$0xff]   ;;  %s2945_s20 = smov 96  }
  0x11   :  { %2547 = vmatprep.subr.bf16.mxu0 %v2942_v1  ;;  %2561 = vmatprep.mubr.msk.bf16.mxu1 %vm2943_vm0, %v2942_v1  ;;  %v2773_v25 = vld [vmem:[#allocation2 + $0x8] sm:$0xff]   ;;  %v2342_v29 = vld [vmem:[%s3439_s3] ss:$0 sm:$0xff]  ;;  %v205_v30 = vadd.s32 8, %v3031_v28  ;;  %v3040_v33 = vand.u32 7, %v3031_v28  ;;  %vm238_vm5 = vcmp.lt.s32.totalorder %v3031_v28, 1 }
  0x12   :  { %2558 = vmatpush3.bf16.msra.mxu1 %v2770_v15  ;;  %vm364_vm8 = vcmp.lt.s32.totalorder %v3031_v28, 7  ;;  %v2776_v47 = vld [vmem:[#allocation2 + $0x28] sm:$0xff]   ;;  %v2777_v52 = vld [vmem:[#allocation2 + $0x20] sm:$0xff]   ;;  %v2779_v3 = vld [vmem:[#allocation2 + $0x38] sm:$0xff]   ;;  %vm486_vm11 = vcmp.lt.s32.totalorder %v3031_v28, 3  ;;  %vm613_vm14 = vcmp.lt.s32.totalorder %v3031_v28, 5 }
  0x13   :  { %46 = vperm.xlu0 %2765, %v39_v4   ;;  %2559 = vmatprep.subr.bf16.mxu1 %v2942_v1  ;;  %v3044_v35 = vand.u32 7, %v205_v30  ;;  %vm241_vm6 = vcmp.ge.s32.totalorder %v3040_v33, 1  ;;  %vm367_vm9 = vcmp.lt.s32.totalorder %v3040_v33, 7  ;;  %v2778_v62 = vld [vmem:[#allocation2 + $0x48] sm:$0xff]   ;;  %v2780_v4 = vld [vmem:[#allocation2 + $0x40] sm:$0xff]   ;;  %vm489_vm12 = vcmp.ge.s32.totalorder %v3040_v33, 3 }
  0x14   :  { %2548 = vmatpush3.bf16.msra.mxu0 %v2767_v5  ;;  %vm616_vm15 = vcmp.lt.s32.totalorder %v3040_v33, 5  ;;  %v2816_v33 = vld [vmem:[#allocation2 + $0x1f8] sm:$0xff]  }
  0x15   :  { %2549 = vmatprep.subr.bf16.mxu0 %v2942_v1  ;;  %vm242_vm7 = vcmp.ge.s32.totalorder %v3044_v35, 1  ;;  %vm368_vm10 = vcmp.lt.s32.totalorder %v3044_v35, 7  ;;  %vm490_vm13 = vcmp.ge.s32.totalorder %v3044_v35, 3 }
  0x16   :  { %2560 = vmatpush3.bf16.msra.mxu1 %v2771_v16 }
  0x17   :  { %2565 = vmatprep.subr.bf16.mxu1 %v2942_v1 }
  0x18   :  { %2550 = vmatpush3.bf16.msra.mxu0 %v2768_v6  ;;  %v2355_v6 = vld [vmem:[%s3441_s5] ss:$0 sm:$0xff] }
  0x19   :  { %2551 = vmatprep.subr.bf16.mxu0 %v2942_v1 }
  0x1c   :  { %2552 = vmatpush3.bf16.msra.mxu0 %v2769_v7 }
  0x1d   :  { %2573 = vmatprep.subr.bf16.mxu0 %v2942_v1 }
  0x8a   :  { %v44_v10 = vpop.permute.xlu0 %43 }
  0x8b   :  { %vm48_vm1 = vcmp.eq.s32.totalorder %v44_v10, %v41_v9  ;;  %v2781_v10 = vld [vmem:[#allocation2 + $0x30] sm:$0xff]  }
  0x8c   :  { %v2335_v12 = vsel %vm48_vm1, 1.0, %v2942_v1  ;;  %vm617_vm1 = vcmp.lt.s32.totalorder %v3044_v35, 5 }
  0x8e   :  { %v47_v11 = vpop.permute.xlu0 %46 }
  0x8f   :  { %vm49_vm2 = vcmp.eq.s32.totalorder %v47_v11, %v41_v9 }
  0x90   :  { %v2336_v13 = vsel %vm49_vm2, 1.0, %v2942_v1 }
  0x91   :  { %v54_v14 = vpack.c.bf16 %v2336_v13, %v2335_v12 }
  0x93   :  { %2554 = vmatmul.mubr.msk.bf16.vlgmr.msra.gmra.mxu0 %vm87_vm3, %v54_v14 }
  0x94   :  { %2577 = vmatprep.mubr.msk.bf16.mxu0 %vm2943_vm0, %v2942_v1  ;;  %2574 = vmatpush3.bf16.msra.mxu0 %v2772_v24 }
  0x95   :  { %2575 = vmatprep.subr.bf16.mxu0 %v2942_v1 }
  0x98   :  { %2576 = vmatpush3.bf16.msra.mxu0 %v2774_v26 }
  0x99   :  { %2589 = vmatprep.subr.bf16.mxu0 %v2942_v1 }
 0x153   :  { %v125_v17 = vpop.f32.mrf.mxu0 }
 0x154   :  { %v132_v20 = vmax.f32 %v125_v17, 0.0 }
 0x155   :  { %v2555_v18 = vpop.f32.mrf.mxu0 }
 0x157   :  { %v128_v19 = vpop.f32.mrf.mxu0 }
 0x158   :  { %v133_v21 = vmax.f32 %v128_v19, 0.0 }
 0x159   :  { %v2556_v22 = vpop.f32.mrf.mxu0 }
 0x15a   :  { %v134_v23 = vpack.c.bf16 %v133_v21, %v132_v20 }
 0x15c   :  { %2562 = vmatmul.mubr.msk.bf16.vlgmr.msra.gmra.mxu1 %vm158_vm4, %v134_v23 }
 0x15d   :  { %2569 = vmatprep.mubr.msk.bf16.mxu1 %vm2943_vm0, %v2942_v1  ;;  %2566 = vmatpush3.bf16.msra.mxu1 %v2773_v25 }
 0x15e   :  { %2567 = vmatprep.subr.bf16.mxu1 %v2942_v1 }
 0x161   :  { %2568 = vmatpush3.bf16.msra.mxu1 %v2775_v27 }
 0x162   :  { %2581 = vmatprep.subr.bf16.mxu1 %v2942_v1 }
 0x21c   :  { %v196_v31 = vpop.f32.mrf.mxu1 }
 0x21d   :  { %v3037_v32 = vadd.f32 %v2342_v29, %v196_v31 }
 0x21e   :  { %v2563_v34 = vpop.f32.mrf.mxu1 }
 0x21f   :  { %458 = vrot.lane.b32.xlu1 %v3037_v32, %s2944_s18  ;;  %v236_v39 = vrot.slane %v3037_v32, 7  ;;  %v362_v48 = vrot.slane %v3037_v32, 1 }
 0x220   :  { %v199_v36 = vpop.f32.mrf.mxu1 }
 0x221   :  { %v3046_v37 = vadd.f32 %v2342_v29, %v199_v36 }
 0x222   :  { %v2564_v38 = vpop.f32.mrf.mxu1 }
 0x223   :  { %v237_v40 = vrot.slane %v3046_v37, 7  ;;  %460 = vrot.lane.b32.xlu1 %v3046_v37, %s2944_s18  ;;  %v230_v41 = vpack.c.bf16 %v3046_v37, %v3037_v32  ;;  %v363_v42 = vrot.slane %v3046_v37, 1 }
 0x225   :  { %2578 = vmatmul.mubr.msk.bf16.vlgmr.msra.gmra.mxu0 %vm158_vm4, %v230_v41  ;;  %v239_v43 = vsel %vm238_vm5, %v236_v39, %v237_v40  ;;  %v240_v44 = vsel %vm238_vm5, %v237_v40, %v236_v39  ;;  %v365_v50 = vsel %vm364_vm8, %v362_v48, %v363_v42  ;;  %v366_v51 = vsel %vm364_vm8, %v363_v42, %v362_v48 }
 0x226   :  { %v243_v45 = vsel %vm241_vm6, %v240_v44, 0.0  ;;  %v244_v46 = vsel %vm242_vm7, %v239_v43, 0.0  ;;  %2593 = vmatprep.mubr.msk.bf16.mxu0 %vm2943_vm0, %v2942_v1  ;;  %v369_v53 = vsel %vm367_vm9, %v365_v50, 0.0  ;;  %v370_v54 = vsel %vm368_vm10, %v366_v51, 0.0  ;;  %2590 = vmatpush3.bf16.msra.mxu0 %v2779_v3  ;;  %v2783_v50 = vld [vmem:[#allocation2 + $0x50] sm:$0xff]  }
 0x227   :  { %v245_v49 = vpack.c.bf16 %v244_v46, %v243_v45  ;;  %v371_v55 = vpack.c.bf16 %v370_v54, %v369_v53  ;;  %2591 = vmatprep.subr.bf16.mxu0 %v2942_v1  ;;  %v2782_v45 = vld [vmem:[#allocation2 + $0x58] sm:$0xff]   ;;  %v2368_v3 = vld [vmem:[%s3441_s5 + $0x1] ss:$0 sm:$0xff] }
 0x229   :  { %2570 = vmatmul.mubr.msk.bf16.vlgmr.msra.gmra.mxu1 %vm158_vm4, %v245_v49 }
 0x22a   :  { %2582 = vmatpush3.bf16.msra.mxu1 %v2776_v47  ;;  %2585 = vmatprep.mubr.msk.bf16.mxu1 %vm2943_vm0, %v2942_v1 }
 0x22b   :  { %2583 = vmatprep.subr.bf16.mxu1 %v2942_v1  ;;  %2592 = vmatpush3.bf16.msra.mxu0 %v2781_v10 }
 0x22c   :  { %2605 = vmatprep.subr.bf16.mxu0 %v2942_v1 }
 0x22e   :  { %2584 = vmatpush3.bf16.msra.mxu1 %v2777_v52 }
 0x22f   :  { %2597 = vmatprep.subr.bf16.mxu1 %v2942_v1 }
 0x231   :  { %2586 = vmatmul.mubr.msk.bf16.vlgmr.msra.gmra.mxu1 %vm158_vm4, %v371_v55 }
 0x232   :  { %2601 = vmatprep.mubr.msk.bf16.mxu1 %vm2943_vm0, %v2942_v1  ;;  %2598 = vmatpush3.bf16.msra.mxu1 %v2778_v62 }
 0x233   :  { %2599 = vmatprep.subr.bf16.mxu1 %v2942_v1 }
 0x236   :  { %2600 = vmatpush3.bf16.msra.mxu1 %v2780_v4 }
 0x237   :  { %2613 = vmatprep.subr.bf16.mxu1 %v2942_v1 }
 0x291   :  { %v459_v8 = vpop.permute.xlu1 %458 }
 0x295   :  { %v461_v18 = vpop.permute.xlu1 %460 }
 0x2e5   :  { %v355_v56 = vpop.f32.mrf.mxu0 }
 0x2e7   :  { %v2579_v57 = vpop.f32.mrf.mxu0 }
 0x2e9   :  { %v299_v58 = vpop.f32.mrf.mxu1  ;;  %v358_v59 = vpop.f32.mrf.mxu0 }
 0x2ea   :  { %v356_v2 = vadd.f32 %v355_v56, %v299_v58 }
 0x2eb   :  { %v2571_v60 = vpop.f32.mrf.mxu1  ;;  %v2580_v61 = vpop.f32.mrf.mxu0 }
 0x2ec   :  { %v2784_v60 = vld [vmem:[#allocation2 + $0x78] sm:$0xff]  }
 0x2ed   :  { %v302_v63 = vpop.f32.mrf.mxu1 }
 0x2ee   :  { %v359_v11 = vadd.f32 %v358_v59, %v302_v63 }
 0x2ef   :  { %v2572_v0 = vpop.f32.mrf.mxu1 }
 0x2f0   :  { %v2785_v0 = vld [vmem:[#allocation2 + $0x70] sm:$0xff]  }
 0x2f1   :  { %v426_v5 = vpop.f32.mrf.mxu1 }
 0x2f2   :  { %v433_v7 = vadd.f32 %v426_v5, %v356_v2 }
 0x2f3   :  { %v2587_v9 = vpop.f32.mrf.mxu1 }
 0x2f4   :  { %v442_v12 = vadd.f32 %v2355_v6, %v433_v7 }
 0x2f5   :  { %v429_v13 = vpop.f32.mrf.mxu1 }
 0x2f6   :  { %v434_v14 = vadd.f32 %v429_v13, %v359_v11  ;;  %v464_v15 = vsub.f32 %v442_v12, %v459_v8  ;;  %v2356_v20 = vmul.f32 -1.442695, %v442_v12 }
 0x2f7   :  { %v2588_v16 = vpop.f32.mrf.mxu1 }
 0x2f8   :  { %v443_v17 = vadd.f32 %v2355_v6, %v434_v14  ;;  %468 = vrot.lane.b32.xlu0 %v464_v15, %s2945_s20  ;;  %2820 = vpow2.f32 %v2356_v20 }
 0x2fa   :  { %v465_v19 = vsub.f32 %v443_v17, %v461_v18  ;;  %v2357_v21 = vmul.f32 -1.442695, %v443_v17 }
 0x2fc   :  { %470 = vrot.lane.b32.xlu1 %v465_v19, %s2945_s20  ;;  %2822 = vpow2.f32 %v2357_v21 }
 0x305   :  { %v2821_v22 = vpop.eup %2820 }
 0x306   :  { %v450_v23 = vadd.f32 1.0, %v2821_v22 }
 0x308   :  { %2824 = vrcp.f32 %v450_v23 }
 0x309   :  { %v2823_v24 = vpop.eup %2822 }
 0x30a   :  { %v451_v25 = vadd.f32 1.0, %v2823_v24 }
 0x30c   :  { %2826 = vrcp.f32 %v451_v25 }
 0x315   :  { %v2825_v26 = vpop.eup %2824 }
 0x319   :  { %v2827_v31 = vpop.eup %2826 }
 0x36a   :  { %v469_v27 = vpop.permute.xlu0 %468 }
 0x36b   :  { %v474_v29 = vmul.f32 %v2825_v26, %v469_v27 }
 0x36d   :  { %v3099_v30 = vadd.f32 %v474_v29, %v3037_v32 }
 0x36e   :  { %v471_v34 = vpop.permute.xlu1 %470 }
 0x36f   :  { %v475_v36 = vmul.f32 %v2827_v31, %v471_v34  ;;  %708 = vrot.lane.b32.xlu0 %v3099_v30, %s2944_s18  ;;  %v484_v39 = vrot.slane %v3099_v30, 5  ;;  %v611_v46 = vrot.slane %v3099_v30, 3 }
 0x371   :  { %v3104_v38 = vadd.f32 %v475_v36, %v3046_v37  ;;  %v2786_v36 = vld [vmem:[#allocation2 + $0xa8] sm:$0xff]  }
 0x373   :  { %v485_v40 = vrot.slane %v3104_v38, 5  ;;  %710 = vrot.lane.b32.xlu1 %v3104_v38, %s2944_s18  ;;  %v478_v32 = vpack.c.bf16 %v3104_v38, %v3099_v30  ;;  %v612_v41 = vrot.slane %v3104_v38, 3 }
 0x375   :  { %2602 = vmatmul.mubr.msk.bf16.vlgmr.msra.gmra.mxu1 %vm158_vm4, %v478_v32  ;;  %v487_v37 = vsel %vm486_vm11, %v484_v39, %v485_v40  ;;  %v488_v42 = vsel %vm486_vm11, %v485_v40, %v484_v39  ;;  %v614_v48 = vsel %vm613_vm14, %v611_v46, %v612_v41  ;;  %v615_v49 = vsel %vm613_vm14, %v612_v41, %v611_v46  ;;  %v2372_v39 = vld [vmem:[%s3441_s5 + $0x2] ss:$0 sm:$0xff] }
 0x376   :  { %v491_v43 = vsel %vm489_vm12, %v488_v42, 0.0  ;;  %v492_v44 = vsel %vm490_vm13, %v487_v37, 0.0  ;;  %2617 = vmatprep.mubr.msk.bf16.mxu1 %vm2943_vm0, %v2942_v1  ;;  %v618_v51 = vsel %vm616_vm15, %v614_v48, 0.0  ;;  %v619_v52 = vsel %vm617_vm1, %v615_v49, 0.0  ;;  %2614 = vmatpush3.bf16.msra.mxu1 %v2784_v60 }
 0x377   :  { %v493_v47 = vpack.c.bf16 %v492_v44, %v491_v43  ;;  %v620_v53 = vpack.c.bf16 %v619_v52, %v618_v51  ;;  %2615 = vmatprep.subr.bf16.mxu1 %v2942_v1 }
 0x379   :  { %2594 = vmatmul.mubr.msk.bf16.vlgmr.msra.gmra.mxu0 %vm158_vm4, %v493_v47 }
 0x37a   :  { %2606 = vmatpush3.bf16.msra.mxu0 %v2782_v45  ;;  %2609 = vmatprep.mubr.msk.bf16.mxu0 %vm2943_vm0, %v2942_v1 }
 0x37b   :  { %2607 = vmatprep.subr.bf16.mxu0 %v2942_v1  ;;  %2616 = vmatpush3.bf16.msra.mxu1 %v2785_v0  ;;  %v2790_v0 = vld [vmem:[#allocation2 + $0xd0] sm:$0xff]  }
 0x37c   :  { %2629 = vmatprep.subr.bf16.mxu1 %v2942_v1 }
 0x37e   :  { %2608 = vmatpush3.bf16.msra.mxu0 %v2783_v50 }
 0x37f   :  { %2621 = vmatprep.subr.bf16.mxu0 %v2942_v1 }
 0x381   :  { %2610 = vmatmul.mubr.msk.bf16.vlgmr.msra.gmra.mxu0 %vm158_vm4, %v620_v53 }
 0x382   :  { %2625 = vmatprep.mubr.msk.bf16.mxu0 %vm2943_vm0, %v2942_v1  ;;  %2622 = vmatpush3.bf16.msra.mxu0 %v2786_v36 }
 0x383   :  { %2623 = vmatprep.subr.bf16.mxu0 %v2942_v1 }
 0x3e1   :  { %v709_v8 = vpop.permute.xlu0 %708 }
 0x3e5   :  { %v711_v14 = vpop.permute.xlu1 %710 }
 0x435   :  { %v604_v54 = vpop.f32.mrf.mxu1 }
 0x437   :  { %v2603_v55 = vpop.f32.mrf.mxu1 }
 0x439   :  { %v548_v56 = vpop.f32.mrf.mxu0  ;;  %v607_v57 = vpop.f32.mrf.mxu1 }
 0x43a   :  { %v605_v63 = vadd.f32 %v604_v54, %v548_v56 }
 0x43b   :  { %v2595_v58 = vpop.f32.mrf.mxu0  ;;  %v2604_v59 = vpop.f32.mrf.mxu1 }
 0x43d   :  { %v551_v61 = vpop.f32.mrf.mxu0 }
 0x43e   :  { %v608_v6 = vadd.f32 %v607_v57, %v551_v61 }
 0x43f   :  { %v2596_v62 = vpop.f32.mrf.mxu0 }
 0x440   :  { %v2788_v62 = vld [vmem:[#allocation2 + $0xd8] sm:$0xff]  }
 0x441   :  { %v675_v2 = vpop.f32.mrf.mxu0 }
 0x442   :  { %v682_v4 = vadd.f32 %v675_v2, %v605_v63  ;;  %v2789_v63 = vld [vmem:[#allocation2 + $0xc8] sm:$0xff]   ;;  %v2379_v2 = vld [vmem:[%s3441_s5 + $0x3] ss:$0 sm:$0xff] }
 0x443   :  { %v2611_v5 = vpop.f32.mrf.mxu0 }
 0x444   :  { %v692_v7 = vadd.f32 %v2368_v3, %v682_v4  ;;  %v2791_v4 = vld [vmem:[#allocation2 + $0xc0] sm:$0xff]  }
 0x445   :  { %v678_v9 = vpop.f32.mrf.mxu0 }
 0x446   :  { %v683_v10 = vadd.f32 %v678_v9, %v608_v6  ;;  %v714_v11 = vsub.f32 %v692_v7, %v709_v8  ;;  %v2369_v16 = vmul.f32 -1.442695, %v692_v7 }
 0x447   :  { %v2612_v12 = vpop.f32.mrf.mxu0 }
 0x448   :  { %v693_v13 = vadd.f32 %v2368_v3, %v683_v10  ;;  %718 = vrot.lane.b32.xlu0 %v714_v11, %s2945_s20  ;;  %2828 = vpow2.f32 %v2369_v16 }
 0x44a   :  { %v715_v15 = vsub.f32 %v693_v13, %v711_v14  ;;  %v2370_v17 = vmul.f32 -1.442695, %v693_v13 }
 0x44c   :  { %720 = vrot.lane.b32.xlu1 %v715_v15, %s2945_s20  ;;  %2830 = vpow2.f32 %v2370_v17 }
 0x455   :  { %v2829_v18 = vpop.eup %2828 }
 0x456   :  { %v700_v19 = vadd.f32 1.0, %v2829_v18 }
 0x458   :  { %2832 = vrcp.f32 %v700_v19 }
 0x459   :  { %v2831_v20 = vpop.eup %2830 }
 0x45a   :  { %v701_v21 = vadd.f32 1.0, %v2831_v20 }
 0x45c   :  { %2834 = vrcp.f32 %v701_v21 }
 0x465   :  { %v2833_v22 = vpop.eup %2832 }
 0x469   :  { %v2835_v26 = vpop.eup %2834 }
 0x4ba   :  { %v719_v23 = vpop.permute.xlu0 %718 }
 0x4bb   :  { %v724_v24 = vmul.f32 %v2833_v22, %v719_v23 }
 0x4bd   :  { %v726_v25 = vadd.f32 %v724_v24, %v3099_v30  ;;  %v2787_v30 = vld [vmem:[#allocation2 + $0xa0] sm:$0xff]  }
 0x4be   :  { %v721_v27 = vpop.permute.xlu1 %720  ;;  %2624 = vmatpush3.bf16.msra.mxu0 %v2787_v30 }
 0x4bf   :  { %v725_v29 = vmul.f32 %v2835_v26, %v721_v27  ;;  %812 = vrot.lane.b32.xlu0 %v726_v25, %s2944_s18  ;;  %2637 = vmatprep.subr.bf16.mxu0 %v2942_v1 }
 0x4c1   :  { %v727_v31 = vadd.f32 %v725_v29, %v3104_v38 }
 0x4c3   :  { %v728_v34 = vpack.c.bf16 %v727_v31, %v726_v25  ;;  %814 = vrot.lane.b32.xlu1 %v727_v31, %s2944_s18 }
 0x4c5   :  { %2618 = vmatmul.mubr.msk.bf16.vlgmr.msra.gmra.mxu1 %vm158_vm4, %v728_v34 }
 0x4c6   :  { %2633 = vmatprep.mubr.msk.bf16.mxu1 %vm2943_vm0, %v2942_v1  ;;  %2630 = vmatpush3.bf16.msra.mxu1 %v2789_v63 }
 0x4c7   :  { %2631 = vmatprep.subr.bf16.mxu1 %v2942_v1 }
 0x4ca   :  { %2632 = vmatpush3.bf16.msra.mxu1 %v2791_v4 }
 0x4cb   :  { %2645 = vmatprep.subr.bf16.mxu1 %v2942_v1 }
 0x531   :  { %v813_v32 = vpop.permute.xlu0 %812 }
 0x535   :  { %v815_v44 = vpop.permute.xlu1 %814 }
 0x585   :  { %v791_v40 = vpop.f32.mrf.mxu1 }
 0x586   :  { %v792_v38 = vadd.f32 %v2372_v39, %v791_v40 }
 0x587   :  { %v2619_v41 = vpop.f32.mrf.mxu1 }
 0x588   :  { %v818_v37 = vsub.f32 %v792_v38, %v813_v32  ;;  %v2376_v47 = vmul.f32 -1.442695, %v792_v38  ;;  %v2792_v32 = vld [vmem:[#allocation2 + $0xe8] sm:$0xff]  }
 0x589   :  { %v794_v42 = vpop.f32.mrf.mxu1 }
 0x58a   :  { %v795_v43 = vadd.f32 %v2372_v39, %v794_v42  ;;  %822 = vrot.lane.b32.xlu0 %v818_v37, %s2945_s20  ;;  %2836 = vpow2.f32 %v2376_v47 }
 0x58b   :  { %v2620_v45 = vpop.f32.mrf.mxu1 }
 0x58c   :  { %v819_v46 = vsub.f32 %v795_v43, %v815_v44  ;;  %v2377_v48 = vmul.f32 -1.442695, %v795_v43  ;;  %v2793_v44 = vld [vmem:[#allocation2 + $0xe0] sm:$0xff]  }
 0x58e   :  { %824 = vrot.lane.b32.xlu1 %v819_v46, %s2945_s20  ;;  %2838 = vpow2.f32 %v2377_v48 }
 0x597   :  { %v2837_v49 = vpop.eup %2836 }
 0x598   :  { %v804_v50 = vadd.f32 1.0, %v2837_v49 }
 0x59a   :  { %2840 = vrcp.f32 %v804_v50 }
 0x59b   :  { %v2839_v51 = vpop.eup %2838 }
 0x59c   :  { %v805_v52 = vadd.f32 1.0, %v2839_v51 }
 0x59e   :  { %2842 = vrcp.f32 %v805_v52 }
 0x5a7   :  { %v2841_v53 = vpop.eup %2840 }
 0x5ab   :  { %v2843_v57 = vpop.eup %2842 }
 0x5fc   :  { %v823_v54 = vpop.permute.xlu0 %822 }
 0x5fd   :  { %v828_v55 = vmul.f32 %v2841_v53, %v823_v54  ;;  %v2794_v54 = vld [vmem:[#allocation2 + $0x108] sm:$0xff]  }
 0x5ff   :  { %v830_v56 = vadd.f32 %v828_v55, %v726_v25 }
 0x600   :  { %v825_v58 = vpop.permute.xlu1 %824 }
 0x601   :  { %v829_v59 = vmul.f32 %v2843_v57, %v825_v58  ;;  %916 = vrot.lane.b32.xlu0 %v830_v56, %s2944_s18  ;;  %v2795_v58 = vld [vmem:[#allocation2 + $0xf8] sm:$0xff]  }
 0x603   :  { %v831_v60 = vadd.f32 %v829_v59, %v727_v31  ;;  %v2796_v59 = vld [vmem:[#allocation2 + $0x100] sm:$0xff]  }
 0x605   :  { %v832_v61 = vpack.c.bf16 %v831_v60, %v830_v56  ;;  %918 = vrot.lane.b32.xlu1 %v831_v60, %s2944_s18 }
 0x607   :  { %2626 = vmatmul.mubr.msk.bf16.vlgmr.msra.gmra.mxu0 %vm158_vm4, %v832_v61  ;;  %v2395_v61 = vld [vmem:[%s3441_s5 + $0x4] ss:$0 sm:$0xff] }
 0x608   :  { %2641 = vmatprep.mubr.msk.bf16.mxu0 %vm2943_vm0, %v2942_v1  ;;  %2638 = vmatpush3.bf16.msra.mxu0 %v2788_v62 }
 0x609   :  { %2639 = vmatprep.subr.bf16.mxu0 %v2942_v1 }
 0x60c   :  { %2640 = vmatpush3.bf16.msra.mxu0 %v2790_v0  ;;  %v2797_v0 = vld [vmem:[#allocation2 + $0xf0] sm:$0xff]  }
 0x60d   :  { %2653 = vmatprep.subr.bf16.mxu0 %v2942_v1 }
 0x673   :  { %v917_v6 = vpop.permute.xlu0 %916 }
 0x677   :  { %v919_v11 = vpop.permute.xlu1 %918 }
 0x6c7   :  { %v895_v3 = vpop.f32.mrf.mxu0 }
 0x6c8   :  { %v896_v5 = vadd.f32 %v2379_v2, %v895_v3 }
 0x6c9   :  { %v2627_v7 = vpop.f32.mrf.mxu0 }
 0x6ca   :  { %v922_v8 = vsub.f32 %v896_v5, %v917_v6  ;;  %v2383_v14 = vmul.f32 -1.442695, %v896_v5 }
 0x6cb   :  { %v898_v9 = vpop.f32.mrf.mxu0 }
 0x6cc   :  { %v899_v10 = vadd.f32 %v2379_v2, %v898_v9  ;;  %926 = vrot.lane.b32.xlu0 %v922_v8, %s2945_s20  ;;  %2844 = vpow2.f32 %v2383_v14 }
 0x6cd   :  { %v2628_v12 = vpop.f32.mrf.mxu0 }
 0x6ce   :  { %v923_v13 = vsub.f32 %v899_v10, %v919_v11  ;;  %v2384_v15 = vmul.f32 -1.442695, %v899_v10 }
 0x6d0   :  { %928 = vrot.lane.b32.xlu1 %v923_v13, %s2945_s20  ;;  %2846 = vpow2.f32 %v2384_v15 }
 0x6d9   :  { %v2845_v16 = vpop.eup %2844 }
 0x6da   :  { %v908_v17 = vadd.f32 1.0, %v2845_v16 }
 0x6dc   :  { %2848 = vrcp.f32 %v908_v17 }
 0x6dd   :  { %v2847_v18 = vpop.eup %2846 }
 0x6de   :  { %v909_v19 = vadd.f32 1.0, %v2847_v18 }
 0x6e0   :  { %2850 = vrcp.f32 %v909_v19 }
 0x6e9   :  { %v2849_v20 = vpop.eup %2848 }
 0x6ed   :  { %v2851_v24 = vpop.eup %2850 }
 0x73e   :  { %v927_v21 = vpop.permute.xlu0 %926 }
 0x73f   :  { %v932_v22 = vmul.f32 %v2849_v20, %v927_v21 }
 0x741   :  { %v3182_v23 = vadd.f32 %v932_v22, %v830_v56 }
 0x742   :  { %v929_v25 = vpop.permute.xlu1 %928 }
 0x743   :  { %v933_v26 = vmul.f32 %v2851_v24, %v929_v25  ;;  %1160 = vrot.lane.b32.xlu0 %v3182_v23, %s2944_s18  ;;  %v942_v29 = vrot.slane %v3182_v23, 7  ;;  %v1066_v41 = vrot.slane %v3182_v23, 1 }
 0x745   :  { %v3186_v27 = vadd.f32 %v933_v26, %v831_v60 }
 0x747   :  { %v943_v31 = vrot.slane %v3186_v27, 7  ;;  %1162 = vrot.lane.b32.xlu1 %v3186_v27, %s2944_s18  ;;  %v936_v34 = vpack.c.bf16 %v3186_v27, %v3182_v23  ;;  %v1067_v36 = vrot.slane %v3186_v27, 1 }
 0x749   :  { %2642 = vmatmul.mubr.msk.bf16.vlgmr.msra.gmra.mxu0 %vm158_vm4, %v936_v34  ;;  %v944_v30 = vsel %vm238_vm5, %v942_v29, %v943_v31  ;;  %v945_v39 = vsel %vm238_vm5, %v943_v31, %v942_v29  ;;  %v1068_v42 = vsel %vm364_vm8, %v1066_v41, %v1067_v36  ;;  %v1069_v43 = vsel %vm364_vm8, %v1067_v36, %v1066_v41 }
 0x74a   :  { %v946_v40 = vsel %vm241_vm6, %v945_v39, 0.0  ;;  %v947_v38 = vsel %vm242_vm7, %v944_v30, 0.0  ;;  %2657 = vmatprep.mubr.msk.bf16.mxu0 %vm2943_vm0, %v2942_v1  ;;  %v1070_v45 = vsel %vm367_vm9, %v1068_v42, 0.0  ;;  %v1071_v46 = vsel %vm368_vm10, %v1069_v43, 0.0  ;;  %2654 = vmatpush3.bf16.msra.mxu0 %v2795_v58  ;;  %v2799_v42 = vld [vmem:[#allocation2 + $0x110] sm:$0xff]  }
 0x74b   :  { %v948_v37 = vpack.c.bf16 %v947_v38, %v946_v40  ;;  %v1072_v47 = vpack.c.bf16 %v1071_v46, %v1070_v45  ;;  %2655 = vmatprep.subr.bf16.mxu0 %v2942_v1  ;;  %v2798_v40 = vld [vmem:[#allocation2 + $0x118] sm:$0xff]   ;;  %v2408_v58 = vld [vmem:[%s3441_s5 + $0x5] ss:$0 sm:$0xff] }
 0x74d   :  { %2634 = vmatmul.mubr.msk.bf16.vlgmr.msra.gmra.mxu1 %vm158_vm4, %v948_v37 }
 0x74e   :  { %2646 = vmatpush3.bf16.msra.mxu1 %v2792_v32  ;;  %2649 = vmatprep.mubr.msk.bf16.mxu1 %vm2943_vm0, %v2942_v1 }
 0x74f   :  { %2647 = vmatprep.subr.bf16.mxu1 %v2942_v1  ;;  %2656 = vmatpush3.bf16.msra.mxu0 %v2797_v0 }
 0x750   :  { %2669 = vmatprep.subr.bf16.mxu0 %v2942_v1 }
 0x752   :  { %2648 = vmatpush3.bf16.msra.mxu1 %v2793_v44 }
 0x753   :  { %2661 = vmatprep.subr.bf16.mxu1 %v2942_v1 }
 0x755   :  { %2650 = vmatmul.mubr.msk.bf16.vlgmr.msra.gmra.mxu1 %vm158_vm4, %v1072_v47 }
 0x756   :  { %2665 = vmatprep.mubr.msk.bf16.mxu1 %vm2943_vm0, %v2942_v1  ;;  %2662 = vmatpush3.bf16.msra.mxu1 %v2794_v54 }
 0x757   :  { %2663 = vmatprep.subr.bf16.mxu1 %v2942_v1 }
 0x75a   :  { %2664 = vmatpush3.bf16.msra.mxu1 %v2796_v59 }
 0x75b   :  { %2677 = vmatprep.subr.bf16.mxu1 %v2942_v1 }
 0x7b5   :  { %v1161_v4 = vpop.permute.xlu0 %1160 }
 0x7b9   :  { %v1163_v10 = vpop.permute.xlu1 %1162 }
 0x809   :  { %v1059_v48 = vpop.f32.mrf.mxu0 }
 0x80b   :  { %v2643_v49 = vpop.f32.mrf.mxu0 }
 0x80d   :  { %v1003_v50 = vpop.f32.mrf.mxu1  ;;  %v1062_v51 = vpop.f32.mrf.mxu0 }
 0x80e   :  { %v1060_v57 = vadd.f32 %v1059_v48, %v1003_v50 }
 0x80f   :  { %v2635_v52 = vpop.f32.mrf.mxu1  ;;  %v2644_v53 = vpop.f32.mrf.mxu0 }
 0x810   :  { %v2800_v52 = vld [vmem:[#allocation2 + $0x138] sm:$0xff]  }
 0x811   :  { %v1006_v55 = vpop.f32.mrf.mxu1 }
 0x812   :  { %v1063_v2 = vadd.f32 %v1062_v51, %v1006_v55 }
 0x813   :  { %v2636_v56 = vpop.f32.mrf.mxu1 }
 0x814   :  { %v2801_v56 = vld [vmem:[#allocation2 + $0x130] sm:$0xff]  }
 0x815   :  { %v1127_v60 = vpop.f32.mrf.mxu1 }
 0x816   :  { %v1134_v62 = vadd.f32 %v1127_v60, %v1060_v57 }
 0x817   :  { %v2651_v63 = vpop.f32.mrf.mxu1 }
 0x818   :  { %v1144_v3 = vadd.f32 %v2395_v61, %v1134_v62 }
 0x819   :  { %v1130_v5 = vpop.f32.mrf.mxu1 }
 0x81a   :  { %v1135_v6 = vadd.f32 %v1130_v5, %v1063_v2  ;;  %v1166_v7 = vsub.f32 %v1144_v3, %v1161_v4  ;;  %v2396_v12 = vmul.f32 -1.442695, %v1144_v3 }
 0x81b   :  { %v2652_v8 = vpop.f32.mrf.mxu1 }
 0x81c   :  { %v1145_v9 = vadd.f32 %v2395_v61, %v1135_v6  ;;  %1170 = vrot.lane.b32.xlu0 %v1166_v7, %s2945_s20  ;;  %2852 = vpow2.f32 %v2396_v12 }
 0x81e   :  { %v1167_v11 = vsub.f32 %v1145_v9, %v1163_v10  ;;  %v2397_v13 = vmul.f32 -1.442695, %v1145_v9 }
 0x820   :  { %1172 = vrot.lane.b32.xlu1 %v1167_v11, %s2945_s20  ;;  %2854 = vpow2.f32 %v2397_v13 }
 0x829   :  { %v2853_v14 = vpop.eup %2852 }
 0x82a   :  { %v1152_v15 = vadd.f32 1.0, %v2853_v14 }
 0x82c   :  { %2856 = vrcp.f32 %v1152_v15 }
 0x82d   :  { %v2855_v16 = vpop.eup %2854 }
 0x82e   :  { %v1153_v17 = vadd.f32 1.0, %v2855_v16 }
 0x830   :  { %2858 = vrcp.f32 %v1153_v17 }
 0x839   :  { %v2857_v18 = vpop.eup %2856 }
 0x83d   :  { %v2859_v22 = vpop.eup %2858 }
 0x88e   :  { %v1171_v19 = vpop.permute.xlu0 %1170 }
 0x88f   :  { %v1176_v20 = vmul.f32 %v2857_v18, %v1171_v19 }
 0x891   :  { %v3233_v21 = vadd.f32 %v1176_v20, %v3182_v23 }
 0x892   :  { %v1173_v24 = vpop.permute.xlu1 %1172 }
 0x893   :  { %v1177_v25 = vmul.f32 %v2859_v22, %v1173_v24  ;;  %1404 = vrot.lane.b32.xlu0 %v3233_v21, %s2944_s18  ;;  %v1186_v29 = vrot.slane %v3233_v21, 5  ;;  %v1310_v38 = vrot.slane %v3233_v21, 3 }
 0x895   :  { %v3238_v26 = vadd.f32 %v1177_v25, %v3186_v27  ;;  %v2802_v25 = vld [vmem:[#allocation2 + $0x168] sm:$0xff]  }
 0x897   :  { %v1187_v31 = vrot.slane %v3238_v26, 5  ;;  %1406 = vrot.lane.b32.xlu1 %v3238_v26, %s2944_s18  ;;  %v1180_v23 = vpack.c.bf16 %v3238_v26, %v3233_v21  ;;  %v1311_v34 = vrot.slane %v3238_v26, 3 }
 0x899   :  { %2666 = vmatmul.mubr.msk.bf16.vlgmr.msra.gmra.mxu1 %vm158_vm4, %v1180_v23  ;;  %v1188_v36 = vsel %vm486_vm11, %v1186_v29, %v1187_v31  ;;  %v1189_v27 = vsel %vm486_vm11, %v1187_v31, %v1186_v29  ;;  %v1312_v41 = vsel %vm613_vm14, %v1310_v38, %v1311_v34  ;;  %v1313_v37 = vsel %vm613_vm14, %v1311_v34, %v1310_v38  ;;  %v2412_v29 = vld [vmem:[%s3441_s5 + $0x6] ss:$0 sm:$0xff] }
 0x89a   :  { %v1190_v30 = vsel %vm489_vm12, %v1189_v27, 0.0  ;;  %v1191_v39 = vsel %vm490_vm13, %v1188_v36, 0.0  ;;  %2681 = vmatprep.mubr.msk.bf16.mxu1 %vm2943_vm0, %v2942_v1  ;;  %v1314_v43 = vsel %vm616_vm15, %v1312_v41, 0.0  ;;  %v1315_v44 = vsel %vm617_vm1, %v1313_v37, 0.0  ;;  %2678 = vmatpush3.bf16.msra.mxu1 %v2800_v52 }
 0x89b   :  { %v1192_v32 = vpack.c.bf16 %v1191_v39, %v1190_v30  ;;  %v1316_v45 = vpack.c.bf16 %v1315_v44, %v1314_v43  ;;  %2679 = vmatprep.subr.bf16.mxu1 %v2942_v1 }
 0x89d   :  { %2658 = vmatmul.mubr.msk.bf16.vlgmr.msra.gmra.mxu0 %vm158_vm4, %v1192_v32 }
 0x89e   :  { %2670 = vmatpush3.bf16.msra.mxu0 %v2798_v40  ;;  %2673 = vmatprep.mubr.msk.bf16.mxu0 %vm2943_vm0, %v2942_v1 }
 0x89f   :  { %2671 = vmatprep.subr.bf16.mxu0 %v2942_v1  ;;  %2680 = vmatpush3.bf16.msra.mxu1 %v2801_v56  ;;  %v2806_v56 = vld [vmem:[#allocation2 + $0x190] sm:$0xff]  }
 0x8a0   :  { %2693 = vmatprep.subr.bf16.mxu1 %v2942_v1 }
 0x8a2   :  { %2672 = vmatpush3.bf16.msra.mxu0 %v2799_v42 }
 0x8a3   :  { %2685 = vmatprep.subr.bf16.mxu0 %v2942_v1 }
 0x8a5   :  { %2674 = vmatmul.mubr.msk.bf16.vlgmr.msra.gmra.mxu0 %vm158_vm4, %v1316_v45 }
 0x8a6   :  { %2689 = vmatprep.mubr.msk.bf16.mxu0 %vm2943_vm0, %v2942_v1  ;;  %2686 = vmatpush3.bf16.msra.mxu0 %v2802_v25 }
 0x8a7   :  { %2687 = vmatprep.subr.bf16.mxu0 %v2942_v1 }
 0x905   :  { %v1405_v63 = vpop.permute.xlu0 %1404 }
 0x909   :  { %v1407_v6 = vpop.permute.xlu1 %1406 }
 0x959   :  { %v1303_v46 = vpop.f32.mrf.mxu1 }
 0x95b   :  { %v2667_v47 = vpop.f32.mrf.mxu1 }
 0x95d   :  { %v1247_v48 = vpop.f32.mrf.mxu0  ;;  %v1306_v49 = vpop.f32.mrf.mxu1 }
 0x95e   :  { %v1304_v55 = vadd.f32 %v1303_v46, %v1247_v48 }
 0x95f   :  { %v2659_v50 = vpop.f32.mrf.mxu0  ;;  %v2668_v51 = vpop.f32.mrf.mxu1 }
 0x961   :  { %v1250_v53 = vpop.f32.mrf.mxu0 }
 0x962   :  { %v1307_v61 = vadd.f32 %v1306_v49, %v1250_v53 }
 0x963   :  { %v2660_v54 = vpop.f32.mrf.mxu0 }
 0x964   :  { %v2804_v54 = vld [vmem:[#allocation2 + $0x198] sm:$0xff]  }
 0x965   :  { %v1371_v57 = vpop.f32.mrf.mxu0 }
 0x966   :  { %v1378_v59 = vadd.f32 %v1371_v57, %v1304_v55  ;;  %v2805_v55 = vld [vmem:[#allocation2 + $0x188] sm:$0xff]   ;;  %v2419_v57 = vld [vmem:[%s3441_s5 + $0x7] ss:$0 sm:$0xff] }
 0x967   :  { %v2675_v60 = vpop.f32.mrf.mxu0 }
 0x968   :  { %v1388_v62 = vadd.f32 %v2408_v58, %v1378_v59  ;;  %v2807_v59 = vld [vmem:[#allocation2 + $0x180] sm:$0xff]  }
 0x969   :  { %v1374_v0 = vpop.f32.mrf.mxu0 }
 0x96a   :  { %v1379_v2 = vadd.f32 %v1374_v0, %v1307_v61  ;;  %v1410_v3 = vsub.f32 %v1388_v62, %v1405_v63  ;;  %v2409_v8 = vmul.f32 -1.442695, %v1388_v62 }
 0x96b   :  { %v2676_v4 = vpop.f32.mrf.mxu0 }
 0x96c   :  { %v1389_v5 = vadd.f32 %v2408_v58, %v1379_v2  ;;  %1414 = vrot.lane.b32.xlu0 %v1410_v3, %s2945_s20  ;;  %2860 = vpow2.f32 %v2409_v8 }
 0x96e   :  { %v1411_v7 = vsub.f32 %v1389_v5, %v1407_v6  ;;  %v2410_v9 = vmul.f32 -1.442695, %v1389_v5 }
 0x970   :  { %1416 = vrot.lane.b32.xlu1 %v1411_v7, %s2945_s20  ;;  %2862 = vpow2.f32 %v2410_v9 }
 0x979   :  { %v2861_v10 = vpop.eup %2860 }
 0x97a   :  { %v1396_v11 = vadd.f32 1.0, %v2861_v10 }
 0x97c   :  { %2864 = vrcp.f32 %v1396_v11 }
 0x97d   :  { %v2863_v12 = vpop.eup %2862 }
 0x97e   :  { %v1397_v13 = vadd.f32 1.0, %v2863_v12 }
 0x980   :  { %2866 = vrcp.f32 %v1397_v13 }
 0x989   :  { %v2865_v14 = vpop.eup %2864 }
 0x98d   :  { %v2867_v18 = vpop.eup %2866 }
 0x9de   :  { %v1415_v15 = vpop.permute.xlu0 %1414 }
 0x9df   :  { %v1420_v16 = vmul.f32 %v2865_v14, %v1415_v15 }
 0x9e1   :  { %v1422_v17 = vadd.f32 %v1420_v16, %v3233_v21  ;;  %v2803_v21 = vld [vmem:[#allocation2 + $0x160] sm:$0xff]  }
 0x9e2   :  { %v1417_v19 = vpop.permute.xlu1 %1416  ;;  %2688 = vmatpush3.bf16.msra.mxu0 %v2803_v21 }
 0x9e3   :  { %v1421_v20 = vmul.f32 %v2867_v18, %v1417_v19  ;;  %1508 = vrot.lane.b32.xlu0 %v1422_v17, %s2944_s18  ;;  %2701 = vmatprep.subr.bf16.mxu0 %v2942_v1 }
 0x9e5   :  { %v1423_v22 = vadd.f32 %v1421_v20, %v3238_v26 }
 0x9e7   :  { %v1424_v24 = vpack.c.bf16 %v1423_v22, %v1422_v17  ;;  %1510 = vrot.lane.b32.xlu1 %v1423_v22, %s2944_s18 }
 0x9e9   :  { %2682 = vmatmul.mubr.msk.bf16.vlgmr.msra.gmra.mxu1 %vm158_vm4, %v1424_v24 }
 0x9ea   :  { %2697 = vmatprep.mubr.msk.bf16.mxu1 %vm2943_vm0, %v2942_v1  ;;  %2694 = vmatpush3.bf16.msra.mxu1 %v2805_v55 }
 0x9eb   :  { %2695 = vmatprep.subr.bf16.mxu1 %v2942_v1 }
 0x9ee   :  { %2696 = vmatpush3.bf16.msra.mxu1 %v2807_v59 }
 0x9ef   :  { %2709 = vmatprep.subr.bf16.mxu1 %v2942_v1 }
 0xa55   :  { %v1509_v23 = vpop.permute.xlu0 %1508 }
 0xa59   :  { %v1511_v39 = vpop.permute.xlu1 %1510 }
 0xaa9   :  { %v1487_v31 = vpop.f32.mrf.mxu1 }
 0xaaa   :  { %v1488_v26 = vadd.f32 %v2412_v29, %v1487_v31 }
 0xaab   :  { %v2683_v34 = vpop.f32.mrf.mxu1 }
 0xaac   :  { %v1514_v36 = vsub.f32 %v1488_v26, %v1509_v23  ;;  %v2416_v32 = vmul.f32 -1.442695, %v1488_v26  ;;  %v2808_v23 = vld [vmem:[#allocation2 + $0x1a8] sm:$0xff]  }
 0xaad   :  { %v1490_v27 = vpop.f32.mrf.mxu1 }
 0xaae   :  { %v1491_v30 = vadd.f32 %v2412_v29, %v1490_v27  ;;  %1518 = vrot.lane.b32.xlu0 %v1514_v36, %s2945_s20  ;;  %2868 = vpow2.f32 %v2416_v32 }
 0xaaf   :  { %v2684_v40 = vpop.f32.mrf.mxu1 }
 0xab0   :  { %v1515_v38 = vsub.f32 %v1491_v30, %v1511_v39  ;;  %v2417_v41 = vmul.f32 -1.442695, %v1491_v30  ;;  %v2809_v39 = vld [vmem:[#allocation2 + $0x1a0] sm:$0xff]  }
 0xab2   :  { %1520 = vrot.lane.b32.xlu1 %v1515_v38, %s2945_s20  ;;  %2870 = vpow2.f32 %v2417_v41 }
 0xabb   :  { %v2869_v37 = vpop.eup %2868 }
 0xabc   :  { %v1500_v42 = vadd.f32 1.0, %v2869_v37 }
 0xabe   :  { %2872 = vrcp.f32 %v1500_v42 }
 0xabf   :  { %v2871_v43 = vpop.eup %2870 }
 0xac0   :  { %v1501_v44 = vadd.f32 1.0, %v2871_v43 }
 0xac2   :  { %2874 = vrcp.f32 %v1501_v44 }
 0xacb   :  { %v2873_v45 = vpop.eup %2872 }
 0xacf   :  { %v2875_v49 = vpop.eup %2874 }
 0xb20   :  { %v1519_v46 = vpop.permute.xlu0 %1518 }
 0xb21   :  { %v1524_v47 = vmul.f32 %v2873_v45, %v1519_v46  ;;  %v2810_v46 = vld [vmem:[#allocation2 + $0x1c8] sm:$0xff]  }
 0xb23   :  { %v1526_v48 = vadd.f32 %v1524_v47, %v1422_v17 }
 0xb24   :  { %v1521_v50 = vpop.permute.xlu1 %1520 }
 0xb25   :  { %v1525_v51 = vmul.f32 %v2875_v49, %v1521_v50  ;;  %1612 = vrot.lane.b32.xlu0 %v1526_v48, %s2944_s18  ;;  %v2811_v50 = vld [vmem:[#allocation2 + $0x1b8] sm:$0xff]  }
 0xb27   :  { %v1527_v52 = vadd.f32 %v1525_v51, %v1423_v22  ;;  %v2812_v51 = vld [vmem:[#allocation2 + $0x1c0] sm:$0xff]  }
 0xb29   :  { %v1528_v53 = vpack.c.bf16 %v1527_v52, %v1526_v48  ;;  %1614 = vrot.lane.b32.xlu1 %v1527_v52, %s2944_s18 }
 0xb2b   :  { %2690 = vmatmul.mubr.msk.bf16.vlgmr.msra.gmra.mxu0 %vm158_vm4, %v1528_v53  ;;  %v2435_v53 = vld [vmem:[%s3441_s5 + $0x8] ss:$0 sm:$0xff] }
 0xb2c   :  { %2705 = vmatprep.mubr.msk.bf16.mxu0 %vm2943_vm0, %v2942_v1  ;;  %2702 = vmatpush3.bf16.msra.mxu0 %v2804_v54 }
 0xb2d   :  { %2703 = vmatprep.subr.bf16.mxu0 %v2942_v1 }
 0xb30   :  { %2704 = vmatpush3.bf16.msra.mxu0 %v2806_v56  ;;  %v2813_v56 = vld [vmem:[#allocation2 + $0x1b0] sm:$0xff]  }
 0xb31   :  { %2717 = vmatprep.subr.bf16.mxu0 %v2942_v1 }
 0xb97   :  { %v1613_v61 = vpop.permute.xlu0 %1612 }
 0xb9b   :  { %v1615_v3 = vpop.permute.xlu1 %1614 }
 0xbeb   :  { %v1591_v58 = vpop.f32.mrf.mxu0 }
 0xbec   :  { %v1592_v60 = vadd.f32 %v2419_v57, %v1591_v58 }
 0xbed   :  { %v2691_v62 = vpop.f32.mrf.mxu0 }
 0xbee   :  { %v1618_v63 = vsub.f32 %v1592_v60, %v1613_v61  ;;  %v2423_v6 = vmul.f32 -1.442695, %v1592_v60 }
 0xbef   :  { %v1594_v0 = vpop.f32.mrf.mxu0 }
 0xbf0   :  { %v1595_v2 = vadd.f32 %v2419_v57, %v1594_v0  ;;  %1622 = vrot.lane.b32.xlu0 %v1618_v63, %s2945_s20  ;;  %2876 = vpow2.f32 %v2423_v6 }
 0xbf1   :  { %v2692_v4 = vpop.f32.mrf.mxu0 }
 0xbf2   :  { %v1619_v5 = vsub.f32 %v1595_v2, %v1615_v3  ;;  %v2424_v7 = vmul.f32 -1.442695, %v1595_v2 }
 0xbf4   :  { %1624 = vrot.lane.b32.xlu1 %v1619_v5, %s2945_s20  ;;  %2878 = vpow2.f32 %v2424_v7 }
 0xbfd   :  { %v2877_v8 = vpop.eup %2876 }
 0xbfe   :  { %v1604_v9 = vadd.f32 1.0, %v2877_v8 }
 0xc00   :  { %2880 = vrcp.f32 %v1604_v9 }
 0xc01   :  { %v2879_v10 = vpop.eup %2878 }
 0xc02   :  { %v1605_v11 = vadd.f32 1.0, %v2879_v10 }
 0xc04   :  { %2882 = vrcp.f32 %v1605_v11 }
 0xc0d   :  { %v2881_v12 = vpop.eup %2880 }
 0xc11   :  { %v2883_v16 = vpop.eup %2882 }
 0xc62   :  { %v1623_v13 = vpop.permute.xlu0 %1622 }
 0xc63   :  { %v1628_v14 = vmul.f32 %v2881_v12, %v1623_v13 }
 0xc65   :  { %v3310_v15 = vadd.f32 %v1628_v14, %v1526_v48 }
 0xc66   :  { %v1625_v17 = vpop.permute.xlu1 %1624 }
 0xc67   :  { %v1629_v18 = vmul.f32 %v2883_v16, %v1625_v17  ;;  %1856 = vrot.lane.b32.xlu0 %v3310_v15, %s2944_s18  ;;  %v1638_v20 = vrot.slane %v3310_v15, 7  ;;  %v1762_v34 = vrot.slane %v3310_v15, 1 }
 0xc69   :  { %v3314_v19 = vadd.f32 %v1629_v18, %v1527_v52 }
 0xc6b   :  { %v1639_v22 = vrot.slane %v3314_v19, 7  ;;  %1858 = vrot.lane.b32.xlu1 %v3314_v19, %s2944_s18  ;;  %v1632_v24 = vpack.c.bf16 %v3314_v19, %v3310_v15  ;;  %v1763_v25 = vrot.slane %v3314_v19, 1 }
 0xc6d   :  { %2706 = vmatmul.mubr.msk.bf16.vlgmr.msra.gmra.mxu0 %vm158_vm4, %v1632_v24  ;;  %v1640_v21 = vsel %vm238_vm5, %v1638_v20, %v1639_v22  ;;  %v1641_v29 = vsel %vm238_vm5, %v1639_v22, %v1638_v20  ;;  %v1764_v27 = vsel %vm364_vm8, %v1762_v34, %v1763_v25  ;;  %v1765_v30 = vsel %vm364_vm8, %v1763_v25, %v1762_v34 }
 0xc6e   :  { %v1642_v31 = vsel %vm241_vm6, %v1641_v29, 0.0  ;;  %v1643_v26 = vsel %vm242_vm7, %v1640_v21, 0.0  ;;  %2721 = vmatprep.mubr.msk.bf16.mxu0 %vm2943_vm0, %v2942_v1  ;;  %v1766_v40 = vsel %vm367_vm9, %v1764_v27, 0.0  ;;  %v1767_v38 = vsel %vm368_vm10, %v1765_v30, 0.0  ;;  %2718 = vmatpush3.bf16.msra.mxu0 %v2811_v50  ;;  %v2815_v27 = vld [vmem:[#allocation2 + $0x1d0] sm:$0xff]  }
 0xc6f   :  { %v1644_v36 = vpack.c.bf16 %v1643_v26, %v1642_v31  ;;  %v1768_v32 = vpack.c.bf16 %v1767_v38, %v1766_v40  ;;  %2719 = vmatprep.subr.bf16.mxu0 %v2942_v1  ;;  %v2814_v31 = vld [vmem:[#allocation2 + $0x1d8] sm:$0xff]  }
 0xc71   :  { %2698 = vmatmul.mubr.msk.bf16.vlgmr.msra.gmra.mxu1 %vm158_vm4, %v1644_v36 }
 0xc72   :  { %2710 = vmatpush3.bf16.msra.mxu1 %v2808_v23  ;;  %2713 = vmatprep.mubr.msk.bf16.mxu1 %vm2943_vm0, %v2942_v1 }
 0xc73   :  { %2711 = vmatprep.subr.bf16.mxu1 %v2942_v1  ;;  %2720 = vmatpush3.bf16.msra.mxu0 %v2813_v56 }
 0xc74   :  { %2733 = vmatprep.subr.bf16.mxu0 %v2942_v1 }
 0xc76   :  { %2712 = vmatpush3.bf16.msra.mxu1 %v2809_v39 }
 0xc77   :  { %2725 = vmatprep.subr.bf16.mxu1 %v2942_v1 }
 0xc79   :  { %2714 = vmatmul.mubr.msk.bf16.vlgmr.msra.gmra.mxu1 %vm158_vm4, %v1768_v32 }
 0xc7a   :  { %2729 = vmatprep.mubr.msk.bf16.mxu1 %vm2943_vm0, %v2942_v1  ;;  %2726 = vmatpush3.bf16.msra.mxu1 %v2810_v46 }
 0xc7b   :  { %2727 = vmatprep.subr.bf16.mxu1 %v2942_v1 }
 0xc7e   :  { %2728 = vmatpush3.bf16.msra.mxu1 %v2812_v51 }
 0xc7f   :  { %2741 = vmatprep.subr.bf16.mxu1 %v2942_v1 }
 0xcd9   :  { %v1857_v59 = vpop.permute.xlu0 %1856 }
 0xcdd   :  { %v1859_v2 = vpop.permute.xlu1 %1858 }
 0xd2d   :  { %v1755_v41 = vpop.f32.mrf.mxu0 }
 0xd2f   :  { %v2707_v37 = vpop.f32.mrf.mxu0 }
 0xd31   :  { %v1699_v42 = vpop.f32.mrf.mxu1  ;;  %v1758_v43 = vpop.f32.mrf.mxu0 }
 0xd32   :  { %v1756_v49 = vadd.f32 %v1755_v41, %v1699_v42 }
 0xd33   :  { %v2699_v44 = vpop.f32.mrf.mxu1  ;;  %v2708_v45 = vpop.f32.mrf.mxu0 }
 0xd34   :  { %v2817_v45 = vld [vmem:[#allocation2 + $0x1f0] sm:$0xff]  }
 0xd35   :  { %v1702_v47 = vpop.f32.mrf.mxu1 }
 0xd36   :  { %v1759_v57 = vadd.f32 %v1758_v43, %v1702_v47  ;;  %v2448_v47 = vld [vmem:[%s3441_s5 + $0x9] ss:$0 sm:$0xff] }
 0xd37   :  { %v2700_v48 = vpop.f32.mrf.mxu1 }
 0xd39   :  { %v1823_v52 = vpop.f32.mrf.mxu1 }
 0xd3a   :  { %v1830_v54 = vadd.f32 %v1823_v52, %v1756_v49 }
 0xd3b   :  { %v2715_v55 = vpop.f32.mrf.mxu1 }
 0xd3c   :  { %v1840_v58 = vadd.f32 %v2435_v53, %v1830_v54 }
 0xd3d   :  { %v1826_v60 = vpop.f32.mrf.mxu1 }
 0xd3e   :  { %v1831_v61 = vadd.f32 %v1826_v60, %v1759_v57  ;;  %v1862_v62 = vsub.f32 %v1840_v58, %v1857_v59  ;;  %v2436_v4 = vmul.f32 -1.442695, %v1840_v58 }
 0xd3f   :  { %v2716_v63 = vpop.f32.mrf.mxu1 }
 0xd40   :  { %v1841_v0 = vadd.f32 %v2435_v53, %v1831_v61  ;;  %1866 = vrot.lane.b32.xlu0 %v1862_v62, %s2945_s20  ;;  %2884 = vpow2.f32 %v2436_v4 }
 0xd42   :  { %v1863_v3 = vsub.f32 %v1841_v0, %v1859_v2  ;;  %v2437_v5 = vmul.f32 -1.442695, %v1841_v0 }
 0xd44   :  { %1868 = vrot.lane.b32.xlu1 %v1863_v3, %s2945_s20  ;;  %2886 = vpow2.f32 %v2437_v5 }
 0xd4d   :  { %v2885_v6 = vpop.eup %2884 }
 0xd4e   :  { %v1848_v7 = vadd.f32 1.0, %v2885_v6 }
 0xd50   :  { %2888 = vrcp.f32 %v1848_v7 }
 0xd51   :  { %v2887_v8 = vpop.eup %2886 }
 0xd52   :  { %v1849_v9 = vadd.f32 1.0, %v2887_v8 }
 0xd54   :  { %2890 = vrcp.f32 %v1849_v9 }
 0xd5d   :  { %v2889_v10 = vpop.eup %2888 }
 0xd61   :  { %v2891_v14 = vpop.eup %2890 }
 0xdb2   :  { %v1867_v11 = vpop.permute.xlu0 %1866 }
 0xdb3   :  { %v1872_v12 = vmul.f32 %v2889_v10, %v1867_v11 }
 0xdb5   :  { %v3361_v13 = vadd.f32 %v1872_v12, %v3310_v15  ;;  %v2818_v12 = vld [vmem:[#allocation2 + $0x228] sm:$0xff]  }
 0xdb6   :  { %v1869_v16 = vpop.permute.xlu1 %1868 }
 0xdb7   :  { %v1873_v17 = vmul.f32 %v2891_v14, %v1869_v16  ;;  %2100 = vrot.lane.b32.xlu0 %v3361_v13, %s2944_s18  ;;  %v1882_v20 = vrot.slane %v3361_v13, 7  ;;  %v2006_v26 = vrot.slane %v3361_v13, 1  ;;  %v2819_v14 = vld [vmem:[#allocation2 + $0x220] sm:$0xff]  }
 0xdb9   :  { %v3366_v18 = vadd.f32 %v1873_v17, %v3314_v19 }
 0xdbb   :  { %v1883_v22 = vrot.slane %v3366_v18, 7  ;;  %2102 = vrot.lane.b32.xlu1 %v3366_v18, %s2944_s18  ;;  %v1876_v15 = vpack.c.bf16 %v3366_v18, %v3361_v13  ;;  %v2007_v24 = vrot.slane %v3366_v18, 1 }
 0xdbd   :  { %2730 = vmatmul.mubr.msk.bf16.vlgmr.msra.gmra.mxu1 %vm158_vm4, %v1876_v15  ;;  %v1884_v25 = vsel %vm238_vm5, %v1882_v20, %v1883_v22  ;;  %v1885_v19 = vsel %vm238_vm5, %v1883_v22, %v1882_v20  ;;  %v2008_v34 = vsel %vm364_vm8, %v2006_v26, %v2007_v24  ;;  %v2009_v36 = vsel %vm364_vm8, %v2007_v24, %v2006_v26 }
 0xdbe   :  { %v1886_v21 = vsel %vm241_vm6, %v1885_v19, 0.0  ;;  %v1887_v29 = vsel %vm242_vm7, %v1884_v25, 0.0  ;;  %2745 = vmatprep.mubr.msk.bf16.mxu1 %vm2943_vm0, %v2942_v1  ;;  %v2010_v30 = vsel %vm367_vm9, %v2008_v34, 0.0  ;;  %v2011_v39 = vsel %vm368_vm10, %v2009_v36, 0.0  ;;  %2742 = vmatpush3.bf16.msra.mxu1 %v2816_v33 }
 0xdbf   :  { %v1888_v23 = vpack.c.bf16 %v1887_v29, %v1886_v21  ;;  %v2012_v40 = vpack.c.bf16 %v2011_v39, %v2010_v30  ;;  %2743 = vmatprep.subr.bf16.mxu1 %v2942_v1 }
 0xdc1   :  { %2722 = vmatmul.mubr.msk.bf16.vlgmr.msra.gmra.mxu0 %vm158_vm4, %v1888_v23 }
 0xdc2   :  { %2734 = vmatpush3.bf16.msra.mxu0 %v2814_v31  ;;  %2737 = vmatprep.mubr.msk.bf16.mxu0 %vm2943_vm0, %v2942_v1 }
 0xdc3   :  { %2735 = vmatprep.subr.bf16.mxu0 %v2942_v1  ;;  %2744 = vmatpush3.bf16.msra.mxu1 %v2817_v45 }
 0xdc6   :  { %2736 = vmatpush3.bf16.msra.mxu0 %v2815_v27 }
 0xdc7   :  { %2749 = vmatprep.subr.bf16.mxu0 %v2942_v1 }
 0xdc9   :  { %2738 = vmatmul.mubr.msk.bf16.vlgmr.msra.gmra.mxu0 %vm158_vm4, %v2012_v40 }
 0xdca   :  { %2753 = vmatprep.mubr.msk.bf16.mxu0 %vm2943_vm0, %v2942_v1  ;;  %2750 = vmatpush3.bf16.msra.mxu0 %v2818_v12 }
 0xdcb   :  { %2751 = vmatprep.subr.bf16.mxu0 %v2942_v1 }
 0xdce   :  { %2752 = vmatpush3.bf16.msra.mxu0 %v2819_v14 }
 0xe29   :  { %v2101_v52 = vpop.permute.xlu0 %2100 }
 0xe2d   :  { %v2103_v58 = vpop.permute.xlu1 %2102 }
 0xe7d   :  { %v1999_v28 = vpop.f32.mrf.mxu1 }
 0xe7f   :  { %v2731_v38 = vpop.f32.mrf.mxu1 }
 0xe81   :  { %v1943_v32 = vpop.f32.mrf.mxu0  ;;  %v2002_v41 = vpop.f32.mrf.mxu1 }
 0xe82   :  { %v2000_v44 = vadd.f32 %v1999_v28, %v1943_v32 }
 0xe83   :  { %v2723_v37 = vpop.f32.mrf.mxu0  ;;  %v2732_v42 = vpop.f32.mrf.mxu1 }
 0xe84   :  { %v2459_v37 = vld [vmem:[%s3441_s5 + $0xb] ss:$0 sm:$0xff] }
 0xe85   :  { %v1946_v43 = vpop.f32.mrf.mxu0 }
 0xe86   :  { %v2003_v50 = vadd.f32 %v2002_v41, %v1946_v43 }
 0xe87   :  { %v2724_v35 = vpop.f32.mrf.mxu0 }
 0xe89   :  { %v2067_v46 = vpop.f32.mrf.mxu0 }
 0xe8a   :  { %v2074_v48 = vadd.f32 %v2067_v46, %v2000_v44 }
 0xe8b   :  { %v2739_v49 = vpop.f32.mrf.mxu0 }
 0xe8c   :  { %v2084_v51 = vadd.f32 %v2448_v47, %v2074_v48 }
 0xe8d   :  { %v2070_v53 = vpop.f32.mrf.mxu0 }
 0xe8e   :  { %v2075_v54 = vadd.f32 %v2070_v53, %v2003_v50  ;;  %v2106_v55 = vsub.f32 %v2084_v51, %v2101_v52  ;;  %v2449_v60 = vmul.f32 -1.442695, %v2084_v51 }
 0xe8f   :  { %v2740_v56 = vpop.f32.mrf.mxu0 }
 0xe90   :  { %v2085_v57 = vadd.f32 %v2448_v47, %v2075_v54  ;;  %2110 = vrot.lane.b32.xlu0 %v2106_v55, %s2945_s20  ;;  %2892 = vpow2.f32 %v2449_v60 }
 0xe92   :  { %v2107_v59 = vsub.f32 %v2085_v57, %v2103_v58  ;;  %v2450_v61 = vmul.f32 -1.442695, %v2085_v57 }
 0xe94   :  { %2112 = vrot.lane.b32.xlu1 %v2107_v59, %s2945_s20  ;;  %2894 = vpow2.f32 %v2450_v61 }
 0xe9d   :  { %v2893_v62 = vpop.eup %2892 }
 0xe9e   :  { %v2092_v63 = vadd.f32 1.0, %v2893_v62 }
 0xea0   :  { %2896 = vrcp.f32 %v2092_v63 }
 0xea1   :  { %v2895_v0 = vpop.eup %2894 }
 0xea2   :  { %v2093_v2 = vadd.f32 1.0, %v2895_v0 }
 0xea4   :  { %2898 = vrcp.f32 %v2093_v2 }
 0xead   :  { %v2897_v3 = vpop.eup %2896 }
 0xeb1   :  { %v2899_v7 = vpop.eup %2898 }
 0xf02   :  { %v2111_v4 = vpop.permute.xlu0 %2110 }
 0xf03   :  { %v2116_v5 = vmul.f32 %v2897_v3, %v2111_v4 }
 0xf05   :  { %v2118_v6 = vadd.f32 %v2116_v5, %v3361_v13  ;;  %v2452_v13 = vld [vmem:[%s3441_s5 + $0xa] ss:$0 sm:$0xff] }
 0xf06   :  { %v2113_v8 = vpop.permute.xlu1 %2112 }
 0xf07   :  { %v2117_v9 = vmul.f32 %v2899_v7, %v2113_v8  ;;  %2204 = vrot.lane.b32.xlu0 %v2118_v6, %s2944_s18 }
 0xf09   :  { %v2119_v10 = vadd.f32 %v2117_v9, %v3366_v18 }
 0xf0b   :  { %v2120_v11 = vpack.c.bf16 %v2119_v10, %v2118_v6  ;;  %2206 = vrot.lane.b32.xlu1 %v2119_v10, %s2944_s18 }
 0xf0d   :  { %2746 = vmatmul.mubr.msk.bf16.vlgmr.msra.gmra.mxu1 %vm158_vm4, %v2120_v11 }
 0xf79   :  { %v2205_v20 = vpop.permute.xlu0 %2204 }
 0xf7d   :  { %v2207_v25 = vpop.permute.xlu1 %2206 }
 0xfcd   :  { %v2183_v16 = vpop.f32.mrf.mxu1 }
 0xfce   :  { %v2184_v17 = vadd.f32 %v2452_v13, %v2183_v16 }
 0xfcf   :  { %v2747_v22 = vpop.f32.mrf.mxu1 }
 0xfd0   :  { %v2210_v18 = vsub.f32 %v2184_v17, %v2205_v20  ;;  %v2456_v1 = vmul.f32 -1.442695, %v2184_v17 }
 0xfd1   :  { %v2186_v15 = vpop.f32.mrf.mxu1 }
 0xfd2   :  { %v2187_v24 = vadd.f32 %v2452_v13, %v2186_v15  ;;  %2214 = vrot.lane.b32.xlu0 %v2210_v18, %s2945_s20  ;;  %2900 = vpow2.f32 %v2456_v1 }
 0xfd3   :  { %v2748_v19 = vpop.f32.mrf.mxu1 }
 0xfd4   :  { %v2211_v21 = vsub.f32 %v2187_v24, %v2207_v25  ;;  %v2457_v29 = vmul.f32 -1.442695, %v2187_v24 }
 0xfd6   :  { %2216 = vrot.lane.b32.xlu1 %v2211_v21, %s2945_s20  ;;  %2902 = vpow2.f32 %v2457_v29 }
 0xfdf   :  { %v2901_v31 = vpop.eup %2900 }
 0xfe0   :  { %v2196_v26 = vadd.f32 1.0, %v2901_v31 }
 0xfe2   :  { %2904 = vrcp.f32 %v2196_v26 }
 0xfe3   :  { %v2903_v23 = vpop.eup %2902 }
 0xfe4   :  { %v2197_v34 = vadd.f32 1.0, %v2903_v23 }
 0xfe6   :  { %2906 = vrcp.f32 %v2197_v34 }
 0xfef   :  { %v2905_v36 = vpop.eup %2904 }
 0xff3   :  { %v2907_v40 = vpop.eup %2906 }
0x1044   :  { %v2215_v27 = vpop.permute.xlu0 %2214 }
0x1045   :  { %v2220_v30 = vmul.f32 %v2905_v36, %v2215_v27 }
0x1047   :  { %v2222_v39 = vadd.f32 %v2220_v30, %v2118_v6 }
0x1048   :  { %v2217_v28 = vpop.permute.xlu1 %2216 }
0x1049   :  { %v2221_v38 = vmul.f32 %v2907_v40, %v2217_v28  ;;  %2308 = vrot.lane.b32.xlu0 %v2222_v39, %s2944_s18 }
0x104b   :  { %v2223_v32 = vadd.f32 %v2221_v38, %v2119_v10 }
0x104d   :  { %v2224_v41 = vpack.c.bf16 %v2223_v32, %v2222_v39  ;;  %2310 = vrot.lane.b32.xlu1 %v2223_v32, %s2944_s18 }
0x104f   :  { %2754 = vmatmul.mubr.msk.bf16.vlgmr.msra.gmra.mxu0 %vm158_vm4, %v2224_v41 }
0x10bb   :  { %v2309_v43 = vpop.permute.xlu0 %2308 }
0x10bf   :  { %v2311_v47 = vpop.permute.xlu1 %2310 }
0x110f   :  { %v2287_v42 = vpop.f32.mrf.mxu0 }
0x1110   :  { %v2288_v33 = vadd.f32 %v2459_v37, %v2287_v42 }
0x1111   :  { %v2755_v35 = vpop.f32.mrf.mxu0 }
0x1112   :  { %v2314_v44 = vsub.f32 %v2288_v33, %v2309_v43  ;;  %v2463_v50 = vmul.f32 -1.442695, %v2288_v33 }
0x1113   :  { %v2290_v45 = vpop.f32.mrf.mxu0 }
0x1114   :  { %v2291_v46 = vadd.f32 %v2459_v37, %v2290_v45  ;;  %2318 = vrot.lane.b32.xlu0 %v2314_v44, %s2945_s20  ;;  %2908 = vpow2.f32 %v2463_v50 }
0x1115   :  { %v2756_v48 = vpop.f32.mrf.mxu0 }
0x1116   :  { %v2315_v49 = vsub.f32 %v2291_v46, %v2311_v47  ;;  %v2464_v51 = vmul.f32 -1.442695, %v2291_v46 }
0x1118   :  { %2320 = vrot.lane.b32.xlu1 %v2315_v49, %s2945_s20  ;;  %2910 = vpow2.f32 %v2464_v51 }
0x1121   :  { %v2909_v52 = vpop.eup %2908 }
0x1122   :  { %v2300_v53 = vadd.f32 1.0, %v2909_v52 }
0x1124   :  { %2912 = vrcp.f32 %v2300_v53 }
0x1125   :  { %v2911_v54 = vpop.eup %2910 }
0x1126   :  { %v2301_v55 = vadd.f32 1.0, %v2911_v54 }
0x1128   :  { %2914 = vrcp.f32 %v2301_v55 }
0x1131   :  { %v2913_v56 = vpop.eup %2912 }
0x1135   :  { %v2915_v60 = vpop.eup %2914 }
0x1186   :  { %v2319_v57 = vpop.permute.xlu0 %2318 }
0x1187   :  { %v2324_v58 = vmul.f32 %v2913_v56, %v2319_v57 }
0x1189   :  { %v2326_v59 = vadd.f32 %v2324_v58, %v2222_v39 }
0x118a   :  { %v2321_v61 = vpop.permute.xlu1 %2320 }
0x118b   :  { %2328 = vst.msk [vmem:[%s3442_s6] sm:$0xff] %vm158_vm4, %v2326_v59  ;;  %v2325_v62 = vmul.f32 %v2915_v60, %v2321_v61 }
0x118d   :  { %v2327_v63 = vadd.f32 %v2325_v62, %v2223_v32 }
0x118f   :  { %2329 = vst.msk [vmem:[%s3442_s6 + $0x8] sm:$0xff] %vm158_vm4, %v2327_v63 }
0x1190   :  { %2334 = vsyncpa [#allocation3], 1 }

</bundles_post_ra>
